<compile_context>
chip_gen: v6e
topology: v6e:2x2x1
jax: 0.10.0
libtpu: 0.0.40
codegen_flags: <defaults>
</compile_context>

<pallas_src>
import functools

import numpy as np
import jax
import jax.numpy as jnp
from jax import lax
from jax.experimental import pallas as pl
from jax.experimental.pallas import tpu as pltpu


def _cdiv(a, b):
    return -(-a // b)


def _build_onehot(ids_t, ins_ref, B, elem_valid=None):
    """ids_t [tn, k] int32 + SMEM ins_ids[B] -> one-hot [tn, k*B] f32 (0/1).

    Column order is b*k + j (instance-major, packed-slot-minor).  Comparisons are
    against SMEM scalars (safe scalar broadcast on the VPU).  Assumes ins_ids are
    unique (as in the PyTorch per-instance loop)."""
    pieces = []
    for b in range(B):
        m = ids_t == ins_ref[b]                       # [tn, k] bool
        if elem_valid is not None:
            m = jnp.logical_and(m, elem_valid)
        pieces.append(m.astype(jnp.float32))
    if len(pieces) == 1:
        return pieces[0]
    return jnp.concatenate(pieces, axis=1)            # [tn, k*B]


# ---------------------------------------------------------------------------
# Pass 1: per-instance channel sums / sums-of-squares / counts.
# grid = (ncores "parallel", tiles_per_core "arbitrary"); each core accumulates into
# its own resident partial; the wrapper sums the partials.
# ---------------------------------------------------------------------------
def _stats_kernel(ins_ref, ids_ref, feat_ref, sum_ref, sq_ref, cnt_ref, *,
                  k, B, tn, np_rows, n_rows):
    t = pl.program_id(1)

    @pl.when(t == 0)
    def _():
        sum_ref[...] = jnp.zeros_like(sum_ref)
        sq_ref[...] = jnp.zeros_like(sq_ref)
        cnt_ref[...] = jnp.zeros_like(cnt_ref)

    # Global tile index (unclamped): rows beyond np_rows are masked out below, which
    # also neutralizes the duplicated tile produced by the clamped index_map when
    # num_tiles is odd and split across two cores.
    tile = pl.program_id(0) * pl.num_programs(1) + t
    row0 = tile * tn
    rows = lax.broadcasted_iota(jnp.int32, (tn, 1), 0) + row0          # packed rows
    cols = lax.broadcasted_iota(jnp.int32, (tn, k), 1)
    elem_valid = (rows * k + cols) < n_rows                            # [tn, k]

    f = feat_ref[...].astype(jnp.float32)                              # [tn, k*C]
    f = jnp.where(rows < np_rows, f, 0.0)          # kill stale / NaN OOB tile rows

    oh = _build_onehot(ids_ref[...], ins_ref, B, elem_valid)           # [tn, k*B]

    dn = (((0,), (0,)), ((), ()))                  # contract over rows: oh^T @ f
    sum_ref[...] += lax.dot_general(oh, f, dn,
                                    preferred_element_type=jnp.float32,
                                    precision=lax.Precision.HIGHEST)
    sq_ref[...] += lax.dot_general(oh, f * f, dn,
                                   preferred_element_type=jnp.float32,
                                   precision=lax.Precision.HIGHEST)
    cnt_ref[...] += jnp.sum(oh, axis=0, keepdims=True)                 # [1, k*B]


# ---------------------------------------------------------------------------
# Pass 2: one fused gather matmul (scale | shift | membership), FMA, optional ReLU.
# Fully parallel, lane-dense, each output element written exactly once.
# ---------------------------------------------------------------------------
def _apply_kernel(ins_ref, ids_ref, feat_ref, abm_ref, out_ref, *,
                  k, B, kc, fuse_relu):
    f = feat_ref[...].astype(jnp.float32)                              # [tn, k*C]
    oh = _build_onehot(ids_ref[...], ins_ref, B)                       # [tn, k*B]
    r = jnp.dot(oh, abm_ref[...],
                preferred_element_type=jnp.float32,
                precision=lax.Precision.HIGHEST)                       # [tn, 3*k*C]
    scale = r[:, :kc]
    shift = r[:, kc:2 * kc]
    member = r[:, 2 * kc:]              # 1.0 where the row belongs to some instance
    # member rows: f*scale + shift ; non-member rows: pass through unchanged.
    y = f * (scale + (1.0 - member)) + shift
    if fuse_relu:
        y = jnp.maximum(y, 0.0)
    out_ref[...] = y.astype(out_ref.dtype)


def sparse_instance_norm(features, ins_indices, ins_ids, gamma, beta, *,
                         num_groups, norm="InsIN", eps=1e-5, fuse_relu=False,
                         row_tile=None):
    """Per-instance normalization of sparse-conv features.

    features:    [N, C] float array (spconv SparseConvTensor.features)
    ins_indices: [N]    int array, per-row instance id (ins_indices_batch)
    ins_ids:     [B]    int array of (unique) instance ids to normalize
    gamma, beta: [C]    affine params (ignored for norm='InsIN')
    """
    N, C = features.shape
    B = int(ins_ids.shape[0])
    out_dtype = features.dtype

    if norm == "InsGN":
        groups, affine = num_groups, True
    elif norm == "InsBN":
        # BatchNorm1d training-mode stats on a [1, C, Ni] view == per-channel norm.
        groups, affine = C, True
    elif norm == "InsIN":
        # InstanceNorm1d on [1, C, Ni]: per-channel over Ni, no affine by default.
        groups, affine = C, False
    else:
        raise ValueError(f"unknown norm {norm!r}")
    assert C % groups == 0
    cpg = C // groups

    if N == 0 or B == 0:   # nothing to normalize; SparseReLU still applies
        out = features
        if fuse_relu:
            out = jnp.maximum(out, 0).astype(out_dtype)
        return out

    gamma_f = (jnp.asarray(gamma, jnp.float32).reshape(C) if affine
               else jnp.ones((C,), jnp.float32))
    beta_f = (jnp.asarray(beta, jnp.float32).reshape(C) if affine
              else jnp.zeros((C,), jnp.float32))

    # ---- lane-dense packing: view [N, C] row-major as [np_rows, k*C] with k*C==128.
    k = 128 // C if (C < 128 and 128 % C == 0) else 1
    kc = k * C
    np_rows = _cdiv(N, k)
    n_pad = np_rows * k

    ids = jnp.asarray(ins_indices, jnp.int32).reshape(N)
    ins_ids_arr = jnp.asarray(ins_ids, jnp.int32).reshape(B)

    feats = features
    if n_pad != N:                      # pad only to a multiple of k (often a no-op)
        feats = jnp.pad(feats, ((0, n_pad - N), (0, 0)))
        ids = jnp.pad(ids, (0, n_pad - N))        # padded slots are masked in-kernel
    feats_pk = feats.reshape(np_rows, kc)
    ids_pk = ids.reshape(np_rows, k)

    # ---- row tile (packed rows).  2048 x 128 f32 = 1 MiB per buffer: far under the
    # scoped-VMEM default even double-buffered, and long enough DMA bursts to sit
    # near the HBM roofline.  Ragged last tiles are masked in-kernel.
    cap = 2048 if row_tile is None else int(row_tile)
    if np_rows >= 8:
        tn = max(8, (min(cap, np_rows) // 8) * 8)
    else:
        tn = np_rows                    # tiny input: block == full array extent
    num_tiles = _cdiv(np_rows, tn)
    ncores = 2 if num_tiles >= 2 else 1     # feed both v7x TensorCores in pass 1
    tiles_per_core = _cdiv(num_tiles, ncores)

    def tile_map(p, t, ins):
        tile = p * tiles_per_core + t
        if ncores > 1:
            tile = jnp.minimum(tile, num_tiles - 1)   # duplicate tile is masked out
        return (tile, 0)

    Bk = B * k

    # ---- pass 1: per-instance sum / sum-of-squares / counts, per-core partials.
    sum_pk, sq_pk, cnt_pk = pl.pallas_call(
        functools.partial(_stats_kernel, k=k, B=B, tn=tn,
                          np_rows=np_rows, n_rows=N),
        out_shape=(jax.ShapeDtypeStruct((ncores, Bk, kc), jnp.float32),
                   jax.ShapeDtypeStruct((ncores, Bk, kc), jnp.float32),
                   jax.ShapeDtypeStruct((ncores, 1, Bk), jnp.float32)),
        grid_spec=pltpu.PrefetchScalarGridSpec(
            num_scalar_prefetch=1,                      # ins_ids -> SMEM
            grid=(ncores, tiles_per_core),
            in_specs=[
                pl.BlockSpec((tn, k), tile_map),        # packed int32 ids
                pl.BlockSpec((tn, kc), tile_map),       # packed features
            ],
            out_specs=[
                pl.BlockSpec((None, Bk, kc), lambda p, t, ins: (p, 0, 0)),
                pl.BlockSpec((None, Bk, kc), lambda p, t, ins: (p, 0, 0)),
                pl.BlockSpec((None, 1, Bk), lambda p, t, ins: (p, 0, 0)),
            ],
        ),
        compiler_params=pltpu.CompilerParams(
            dimension_semantics=("parallel", "arbitrary")),
    )(ins_ids_arr, ids_pk, feats_pk)

    # ---- finalize statistics on tiny arrays (plain XLA; negligible work).
    sum_all = jnp.sum(sum_pk, axis=0)                   # [Bk, kc]
    sq_all = jnp.sum(sq_pk, axis=0)
    cnt_all = jnp.sum(cnt_pk, axis=0)                   # [1, Bk]

    s4 = sum_all.reshape(B, k, k, C)                    # rows (b, j), cols (j', c)
    q4 = sq_all.reshape(B, k, k, C)
    ch_sum = sum(s4[:, j, j, :] for j in range(k))      # [B, C]
    ch_sq = sum(q4[:, j, j, :] for j in range(k))
    counts = cnt_all.reshape(B, k).sum(axis=1)          # [B]

    denom = jnp.maximum(counts * float(cpg), 1.0)[:, None]            # [B, 1]
    g_sum = jnp.sum(ch_sum.reshape(B, groups, cpg), axis=-1)          # [B, G]
    g_sq = jnp.sum(ch_sq.reshape(B, groups, cpg), axis=-1)
    mean_g = g_sum / denom
    var_g = jnp.maximum(g_sq / denom - mean_g * mean_g, 0.0)   # guard cancellation
    inv_g = lax.rsqrt(var_g + eps)
    mean_c = jnp.repeat(mean_g, cpg, axis=1)                   # [B, C]
    inv_c = jnp.repeat(inv_g, cpg, axis=1)

    scale = inv_c * gamma_f[None, :]                           # [B, C]
    shift = beta_f[None, :] - mean_c * scale

    # Fused block-diagonal gather matrix [Bk, 3*k*C]: scale | shift | membership.
    eye_k = jnp.eye(k, dtype=jnp.float32)

    def blkdiag(x):                       # [B, C] -> [B*k, k*C], rows (b,j), cols (j',c)
        return (x[:, None, None, :] * eye_k[None, :, :, None]).reshape(Bk, kc)

    abm = jnp.concatenate([blkdiag(scale), blkdiag(shift),
                           blkdiag(jnp.ones((B, C), jnp.float32))], axis=1)

    # ---- pass 2: single lane-dense normalization sweep, each row written once.
    out_pk = pl.pallas_call(
        functools.partial(_apply_kernel, k=k, B=B, kc=kc, fuse_relu=fuse_relu),
        out_shape=jax.ShapeDtypeStruct((np_rows, kc), out_dtype),
        grid_spec=pltpu.PrefetchScalarGridSpec(
            num_scalar_prefetch=1,
            grid=(num_tiles,),
            in_specs=[
                pl.BlockSpec((tn, k), lambda t, ins: (t, 0)),
                pl.BlockSpec((tn, kc), lambda t, ins: (t, 0)),
                pl.BlockSpec((Bk, 3 * kc), lambda t, ins: (0, 0)),
            ],
            out_specs=pl.BlockSpec((tn, kc), lambda t, ins: (t, 0)),
        ),
        compiler_params=pltpu.CompilerParams(dimension_semantics=("parallel",)),
    )(ins_ids_arr, ids_pk, feats_pk, abm)

    out = out_pk.reshape(n_pad, C)
    if n_pad != N:
        out = out[:N]
    return out


def _reference(feats, ids, ins_ids, gamma, beta, *, num_groups, eps, affine, relu):
    out = feats.astype(np.float64).copy()
    C = feats.shape[1]
    cpg = C // num_groups
    for i in ins_ids:
        sel = ids == i
        ni = int(sel.sum())
        if ni == 0:
            continue
        x = feats[sel].astype(np.float64).reshape(ni, num_groups, cpg)
        mean = x.mean(axis=(0, 2), keepdims=True)
        var = x.var(axis=(0, 2), keepdims=True)
        y = ((x - mean) / np.sqrt(var + eps)).reshape(ni, C)
        if affine:
            y = y * gamma.astype(np.float64) + beta.astype(np.float64)
        out[sel] = y
    if relu:
        out = np.maximum(out, 0.0)
    return out


if __name__ == "__main__":
    key = jax.random.PRNGKey(0)
    N, C = 203, 64                    # active sparse sites, channels (k = 2 packing)
    num_instances = 2
    num_groups = 32                   # SparseInsGNBNIN(32, out_channels, norm)

    kf, kb = jax.random.split(key)
    features = jax.random.normal(kf, (N, C), dtype=jnp.float32)
    # Per-site instance id; id == num_instances is NOT in ins_ids -> passed through
    # by the norm (exercises the membership mask), but still ReLU'd when fused.
    ins_indices = jax.random.randint(kb, (N,), 0, num_instances + 1, dtype=jnp.int32)
    ins_ids = jnp.arange(num_instances, dtype=jnp.int32)

    gamma = 1.0 + 0.01 * jnp.arange(C, dtype=jnp.float32)
    beta = -0.02 * jnp.arange(C, dtype=jnp.float32)

    # InsGN + fused ReLU (aspp_norm -> aspp_relu path); default (large) row tile.
    out_gn = sparse_instance_norm(features, ins_indices, ins_ids, gamma, beta,
                                  num_groups=num_groups, norm="InsGN",
                                  fuse_relu=True)
    out_gn = jax.block_until_ready(out_gn)
    ref_gn = _reference(np.array(features), np.array(ins_indices), np.array(ins_ids),
                        np.array(gamma), np.array(beta),
                        num_groups=num_groups, eps=1e-5, affine=True, relu=True)
    np.testing.assert_allclose(np.array(out_gn), ref_gn, rtol=1e-3, atol=1e-3)

    # InsIN (module default): per-channel, no affine; small row tile to exercise the
    # multi-tile / ragged-last-tile / two-core partial-accumulator paths.
    out_in = sparse_instance_norm(features, ins_indices, ins_ids, gamma, beta,
                                  num_groups=num_groups, norm="InsIN",
                                  fuse_relu=True, row_tile=32)
    out_in = jax.block_until_ready(out_in)
    ref_in = _reference(np.array(features), np.array(ins_indices), np.array(ins_ids),
                        np.array(gamma), np.array(beta),
                        num_groups=C, eps=1e-5, affine=False, relu=True)
    np.testing.assert_allclose(np.array(out_in), ref_in, rtol=1e-3, atol=1e-3)

    print("KERNEL_OK")
</pallas_src>

<mosaic_0001>
module attributes {stable_mosaic.version = 11 : i64} {
  func.func @_stats_kernel(%arg0: i32, %arg1: i32, %arg2: memref<2xi32, #tpu.memory_space<smem>>, %arg3: memref<96x2xi32, #tpu.memory_space<vmem>>, %arg4: memref<96x128xf32, #tpu.memory_space<vmem>>, %arg5: memref<1x4x128xf32, #tpu.memory_space<vmem>>, %arg6: memref<1x4x128xf32, #tpu.memory_space<vmem>>, %arg7: memref<1x1x4xf32, #tpu.memory_space<vmem>>) attributes {dimension_semantics = [#tpu.dimension_semantics<parallel>, #tpu.dimension_semantics<arbitrary>], iteration_bounds = array<i64: 2, 1>, scalar_prefetch = 1 : i64, scratch_operands = 0 : i64, tpu.core_type = #tpu.core_type<tc>, window_params = [{transform_indices = @transform_0, window_bounds = array<i64: 96, 2>}, {transform_indices = @transform_1, window_bounds = array<i64: 96, 128>}, {transform_indices = @transform_2, window_bounds = array<i64: 1, 4, 128>}, {transform_indices = @transform_3, window_bounds = array<i64: 1, 4, 128>}, {transform_indices = @transform_4, window_bounds = array<i64: 1, 1, 4>}]} {
    %c0_i32 = arith.constant 0 : i32
    %0 = arith.cmpi eq, %arg1, %c0_i32 : i32
    %1 = arith.extui %0 : i1 to i32
    %c0_i32_0 = arith.constant 0 : i32
    %2 = arith.cmpi ne, %1, %c0_i32_0 : i32
    scf.if %2 {
      %cst_26 = arith.constant 0.000000e+00 : f32
      %60 = vector.broadcast %cst_26 : f32 to vector<4x128xf32>
      %c0_27 = arith.constant 0 : index
      %c0_28 = arith.constant 0 : index
      %c0_29 = arith.constant 0 : index
      %61 = vector.load %arg5[%c0_27, %c0_28, %c0_29] : memref<1x4x128xf32, #tpu.memory_space<vmem>>, vector<1x4x128xf32>
      %62 = vector.shape_cast %61 : vector<1x4x128xf32> to vector<4x128xf32>
      %63 = vector.shape_cast %60 : vector<4x128xf32> to vector<1x4x128xf32>
      tpu.vector_store %arg5[%c0_27, %c0_28, %c0_29], %63 {strides = array<i32>} : memref<1x4x128xf32, #tpu.memory_space<vmem>>, vector<1x4x128xf32>,
      %cst_30 = arith.constant 0.000000e+00 : f32
      %64 = vector.broadcast %cst_30 : f32 to vector<4x128xf32>
      %c0_31 = arith.constant 0 : index
      %c0_32 = arith.constant 0 : index
      %c0_33 = arith.constant 0 : index
      %65 = vector.load %arg6[%c0_31, %c0_32, %c0_33] : memref<1x4x128xf32, #tpu.memory_space<vmem>>, vector<1x4x128xf32>
      %66 = vector.shape_cast %65 : vector<1x4x128xf32> to vector<4x128xf32>
      %67 = vector.shape_cast %64 : vector<4x128xf32> to vector<1x4x128xf32>
      tpu.vector_store %arg6[%c0_31, %c0_32, %c0_33], %67 {strides = array<i32>} : memref<1x4x128xf32, #tpu.memory_space<vmem>>, vector<1x4x128xf32>,
      %cst_34 = arith.constant 0.000000e+00 : f32
      %68 = vector.broadcast %cst_34 : f32 to vector<1x4xf32>
      %c0_35 = arith.constant 0 : index
      %c0_36 = arith.constant 0 : index
      %c0_37 = arith.constant 0 : index
      %69 = vector.load %arg7[%c0_35, %c0_36, %c0_37] : memref<1x1x4xf32, #tpu.memory_space<vmem>>, vector<1x1x4xf32>
      %70 = vector.shape_cast %69 : vector<1x1x4xf32> to vector<1x4xf32>
      %71 = vector.shape_cast %68 : vector<1x4xf32> to vector<1x1x4xf32>
      tpu.vector_store %arg7[%c0_35, %c0_36, %c0_37], %71 {strides = array<i32>} : memref<1x1x4xf32, #tpu.memory_space<vmem>>, vector<1x1x4xf32>,
    } else {
    }
    %c1_i32 = arith.constant 1 : i32
    %3 = arith.muli %arg0, %c1_i32 : i32
    %4 = arith.addi %3, %arg1 : i32
    %c96_i32 = arith.constant 96 : i32
    %5 = arith.muli %4, %c96_i32 : i32
    %6 = tpu.iota {dimensions = array<i32: 0>} : vector<96x1xi32>
    %7 = vector.broadcast %5 : i32 to vector<96x1xi32>
    %8 = arith.addi %6, %7 : vector<96x1xi32>
    %9 = tpu.iota {dimensions = array<i32: 1>} : vector<96x2xi32>
    %c2_i32 = arith.constant 2 : i32
    %10 = vector.broadcast %c2_i32 : i32 to vector<96x1xi32>
    %11 = arith.muli %8, %10 : vector<96x1xi32>
    %12 = vector.broadcast %11 : vector<96x1xi32> to vector<96x2xi32>
    %13 = arith.addi %12, %9 : vector<96x2xi32>
    %c203_i32 = arith.constant 203 : i32
    %14 = vector.broadcast %c203_i32 : i32 to vector<96x2xi32>
    %15 = arith.cmpi slt, %13, %14 : vector<96x2xi32>
    %c0 = arith.constant 0 : index
    %c0_1 = arith.constant 0 : index
    %16 = vector.load %arg4[%c0, %c0_1] : memref<96x128xf32, #tpu.memory_space<vmem>>, vector<96x128xf32>
    %c102_i32 = arith.constant 102 : i32
    %17 = vector.broadcast %c102_i32 : i32 to vector<96x1xi32>
    %18 = arith.cmpi slt, %8, %17 : vector<96x1xi32>
    %cst = arith.constant 0.000000e+00 : f32
    %19 = vector.shape_cast %18 : vector<96x1xi1> to vector<96x1xi1>
    %20 = vector.broadcast %19 : vector<96x1xi1> to vector<96x128xi1>
    %21 = vector.broadcast %cst : f32 to vector<96x128xf32>
    %22 = arith.select %20, %16, %21 : vector<96x128xi1>, vector<96x128xf32>
    %c0_2 = arith.constant 0 : index
    %c0_3 = arith.constant 0 : index
    %23 = vector.load %arg3[%c0_2, %c0_3] : memref<96x2xi32, #tpu.memory_space<vmem>>, vector<96x2xi32>
    %c0_4 = arith.constant 0 : index
    %24 = memref.load %arg2[%c0_4] : memref<2xi32, #tpu.memory_space<smem>>
    %25 = vector.broadcast %24 : i32 to vector<96x2xi32>
    %26 = arith.cmpi eq, %23, %25 : vector<96x2xi32>
    %27 = arith.andi %26, %15 : vector<96x2xi1>
    %28 = arith.extui %27 : vector<96x2xi1> to vector<96x2xi32>
    %29 = arith.sitofp %28 : vector<96x2xi32> to vector<96x2xf32>
    %c1 = arith.constant 1 : index
    %30 = memref.load %arg2[%c1] : memref<2xi32, #tpu.memory_space<smem>>
    %31 = vector.broadcast %30 : i32 to vector<96x2xi32>
    %32 = arith.cmpi eq, %23, %31 : vector<96x2xi32>
    %33 = arith.andi %32, %15 : vector<96x2xi1>
    %34 = arith.extui %33 : vector<96x2xi1> to vector<96x2xi32>
    %35 = arith.sitofp %34 : vector<96x2xi32> to vector<96x2xf32>
    %36 = tpu.concatenate %29, %35 in 1 : vector<96x2xf32>, vector<96x2xf32> -> vector<96x4xf32>
    %c0_5 = arith.constant 0 : index
    %c0_6 = arith.constant 0 : index
    %c0_7 = arith.constant 0 : index
    %37 = vector.load %arg5[%c0_5, %c0_6, %c0_7] : memref<1x4x128xf32, #tpu.memory_space<vmem>>, vector<1x4x128xf32>
    %38 = vector.shape_cast %37 : vector<1x4x128xf32> to vector<4x128xf32>
    %cst_8 = arith.constant dense<0.000000e+00> : vector<4x128xf32>
    %39 = tpu.matmul %36, %22, %cst_8 {dimension_numbers = #tpu.dot_dimension_numbers<[0], [0], [1], [1], [0, 1, 1, 1], [], []>, precision = #tpu.contract_precision<fp32>} : vector<96x4xf32>, vector<96x128xf32>, vector<4x128xf32> -> vector<4x128xf32>
    %40 = arith.addf %38, %39 : vector<4x128xf32>
    %c0_9 = arith.constant 0 : index
    %c0_10 = arith.constant 0 : index
    %c0_11 = arith.constant 0 : index
    %41 = vector.load %arg5[%c0_9, %c0_10, %c0_11] : memref<1x4x128xf32, #tpu.memory_space<vmem>>, vector<1x4x128xf32>
    %42 = vector.shape_cast %41 : vector<1x4x128xf32> to vector<4x128xf32>
    %43 = vector.shape_cast %40 : vector<4x128xf32> to vector<1x4x128xf32>
    tpu.vector_store %arg5[%c0_9, %c0_10, %c0_11], %43 {strides = array<i32>} : memref<1x4x128xf32, #tpu.memory_space<vmem>>, vector<1x4x128xf32>,
    %c0_12 = arith.constant 0 : index
    %c0_13 = arith.constant 0 : index
    %c0_14 = arith.constant 0 : index
    %44 = vector.load %arg6[%c0_12, %c0_13, %c0_14] : memref<1x4x128xf32, #tpu.memory_space<vmem>>, vector<1x4x128xf32>
    %45 = vector.shape_cast %44 : vector<1x4x128xf32> to vector<4x128xf32>
    %46 = arith.mulf %22, %22 : vector<96x128xf32>
    %cst_15 = arith.constant dense<0.000000e+00> : vector<4x128xf32>
    %47 = tpu.matmul %36, %46, %cst_15 {dimension_numbers = #tpu.dot_dimension_numbers<[0], [0], [1], [1], [0, 1, 1, 1], [], []>, precision = #tpu.contract_precision<fp32>} : vector<96x4xf32>, vector<96x128xf32>, vector<4x128xf32> -> vector<4x128xf32>
    %48 = arith.addf %45, %47 : vector<4x128xf32>
    %c0_16 = arith.constant 0 : index
    %c0_17 = arith.constant 0 : index
    %c0_18 = arith.constant 0 : index
    %49 = vector.load %arg6[%c0_16, %c0_17, %c0_18] : memref<1x4x128xf32, #tpu.memory_space<vmem>>, vector<1x4x128xf32>
    %50 = vector.shape_cast %49 : vector<1x4x128xf32> to vector<4x128xf32>
    %51 = vector.shape_cast %48 : vector<4x128xf32> to vector<1x4x128xf32>
    tpu.vector_store %arg6[%c0_16, %c0_17, %c0_18], %51 {strides = array<i32>} : memref<1x4x128xf32, #tpu.memory_space<vmem>>, vector<1x4x128xf32>,
    %c0_19 = arith.constant 0 : index
    %c0_20 = arith.constant 0 : index
    %c0_21 = arith.constant 0 : index
    %52 = vector.load %arg7[%c0_19, %c0_20, %c0_21] : memref<1x1x4xf32, #tpu.memory_space<vmem>>, vector<1x1x4xf32>
    %53 = vector.shape_cast %52 : vector<1x1x4xf32> to vector<1x4xf32>
    %cst_22 = arith.constant dense<0.000000e+00> : vector<4xf32>
    %54 = vector.multi_reduction <add>, %36, %cst_22 [0] : vector<96x4xf32> to vector<4xf32>
    %55 = vector.shape_cast %54 : vector<4xf32> to vector<1x4xf32>
    %56 = arith.addf %53, %55 : vector<1x4xf32>
    %c0_23 = arith.constant 0 : index
    %c0_24 = arith.constant 0 : index
    %c0_25 = arith.constant 0 : index
    %57 = vector.load %arg7[%c0_23, %c0_24, %c0_25] : memref<1x1x4xf32, #tpu.memory_space<vmem>>, vector<1x1x4xf32>
    %58 = vector.shape_cast %57 : vector<1x1x4xf32> to vector<1x4xf32>
    %59 = vector.shape_cast %56 : vector<1x4xf32> to vector<1x1x4xf32>
    tpu.vector_store %arg7[%c0_23, %c0_24, %c0_25], %59 {strides = array<i32>} : memref<1x1x4xf32, #tpu.memory_space<vmem>>, vector<1x1x4xf32>,
    return
  }
  func.func @transform_0(%arg0: i32, %arg1: i32, %arg2: memref<2xi32, #tpu.memory_space<smem>>) -> (i32, i32) {
    %c1_i32 = arith.constant 1 : i32
    %0 = arith.muli %arg0, %c1_i32 : i32
    %1 = arith.addi %0, %arg1 : i32
    %c1_i32_0 = arith.constant 1 : i32
    %2 = arith.minsi %1, %c1_i32_0 : i32
    %c0_i32 = arith.constant 0 : i32
    %c0_i32_1 = arith.constant 0 : i32
    return %2, %c0_i32 : i32, i32
  }
  func.func @transform_1(%arg0: i32, %arg1: i32, %arg2: memref<2xi32, #tpu.memory_space<smem>>) -> (i32, i32) {
    %c1_i32 = arith.constant 1 : i32
    %0 = arith.muli %arg0, %c1_i32 : i32
    %1 = arith.addi %0, %arg1 : i32
    %c1_i32_0 = arith.constant 1 : i32
    %2 = arith.minsi %1, %c1_i32_0 : i32
    %c0_i32 = arith.constant 0 : i32
    %c0_i32_1 = arith.constant 0 : i32
    return %2, %c0_i32 : i32, i32
  }
  func.func @transform_2(%arg0: i32, %arg1: i32, %arg2: memref<2xi32, #tpu.memory_space<smem>>) -> (i32, i32, i32) {
    %c0_i32 = arith.constant 0 : i32
    %c0_i32_0 = arith.constant 0 : i32
    %c0_i32_1 = arith.constant 0 : i32
    return %arg0, %c0_i32, %c0_i32_0 : i32, i32, i32
  }
  func.func @transform_3(%arg0: i32, %arg1: i32, %arg2: memref<2xi32, #tpu.memory_space<smem>>) -> (i32, i32, i32) {
    %c0_i32 = arith.constant 0 : i32
    %c0_i32_0 = arith.constant 0 : i32
    %c0_i32_1 = arith.constant 0 : i32
    return %arg0, %c0_i32, %c0_i32_0 : i32, i32, i32
  }
  func.func @transform_4(%arg0: i32, %arg1: i32, %arg2: memref<2xi32, #tpu.memory_space<smem>>) -> (i32, i32, i32) {
    %c0_i32 = arith.constant 0 : i32
    %c0_i32_0 = arith.constant 0 : i32
    %c0_i32_1 = arith.constant 0 : i32
    return %arg0, %c0_i32, %c0_i32_0 : i32, i32, i32
  }
}

</mosaic_0001>

<bundles_post_ra>
// kernel: tpu_custom_call.1
= control target key start
LH: loop header
LB: loop body
LE: loop exit
PB: predicated region body
PF: predicated region fallthrough
CT: control target
= control target key end

     0   :  { %s4018_s0 = inlined_call_operand.vmem [shape: s32[2], index: 0, kind: input, shape index: {}]   ;;  %s4019_s1 = inlined_call_operand.vmem [shape: s32[102,2], index: 1, kind: input, shape index: {}]   ;;  %s4020_s2 = inlined_call_operand.vmem [shape: f32[102,128], index: 2, kind: input, shape index: {}]   ;;  %s4021_s3 = inlined_call_operand.hbm [shape: f32[2,4,128], index: 3, kind: output, shape index: {0}]   ;;  %s4022_s4 = inlined_call_operand.hbm [shape: f32[2,4,128], index: 4, kind: output, shape index: {1}]   ;;  %s4023_s5 = inlined_call_operand.hbm [shape: f32[2,1,4], index: 5, kind: output, shape index: {2}]  }
   0x1   :  { %s11_s20 = sshll.u32 %s4018_s0, 4  ;;  %s12_s20 = int_to_ptr.vmem [resolvable:$true] %s11_s20 }
   0x2   :  { %s2686_s21 = scalar_lea.vmem %s12_s20, 16  ;;  %p2691_p1 = scmp.lt.s32.totalorder %s12_s20, %s12_s20 }
   0x3   :  { %p2687_p0 = scmp.ne.s32.totalorder %s12_s20, %s2686_s21  ;;  %p2692_p2 = scmp.lt.s32.totalorder %s2686_s21, %s2686_s21 }
   0x5   :  { %p2693_p3 = por %p2692_p2, %p2691_p1 }
   0x7   :  { %p2694_p4 = pnand %p2693_p3, %p2687_p0 }
   0x9   :  { %2697 = shalt.err (!%p2694_p4)  }
   0xa   :  { %s2834_s22 = smov [#allocation3]  }
   0xb   :  { %14 = dma.vmem_to_smem %s12_s20, 16, %s2834_s22, [#allocation2] }
   0xc   :  { %2800 = dma.done.wait [#allocation2], 16 }
   0xd   :  { %2801 = vsyncadd [#allocation2], 4294967280 }
   0xe   :  { %16 = sfence }
   0xf   :  { %17 = vsyncpa [#allocation5], 0 }
  0x10   :  { %19 = vsyncpa [#allocation5 + $0x1], 0 }
  0x11   :  { %20 = vsyncpa [#allocation7], 0 }
  0x12   :  { %22 = vsyncpa [#allocation7 + $0x1], 0  ;;  %s2874_s23 = smov 0   ;;  %s2876_s0 = smov 0  }
  0x13   :  { %s2878_s24 = smov 0   ;;  %s2880_s25 = smov 0  }
  0x14   :  { %s2882_s26 = smov 0   ;;  %s2884_s27 = smov 0  }
  0x15 LB: > { %s2096_s28 = sadd.s32 4294967295, %s2832_s27   ;;  %s4033_s29 = sadd.s32 4294967294, %s2832_s27   ;;  %s2832_s27 = sphi %s2884_s27, %s28_s27   ;;  %s2828_s26 = sphi %s2882_s26, %s4081_s26   ;;  %s2824_s25 = sphi %s2880_s25, %s4080_s25   ;;  %s2820_s24 = sphi %s2878_s24, %s4079_s24   ;;  %s2816_s0 = sphi %s2876_s0, %s4078_s0   ;;  %s2812_s23 = sphi %s2874_s23, %s4077_s23  }
  0x16   : > { %s40_s30 = sadd.s32 1, %s2828_s26  ;;  %s111_s6 = sadd.s32 1, %s2820_s24 }
  0x17   : > { %p42_p5 = scmp.ge.s32.totalorder %s40_s30, 2  ;;  %p121_p6 = scmp.ne.s32.totalorder %s2820_s24, %s2816_s0 }
  0x18   : > { %p122_p7 = scmp.eq.s32.totalorder %s2096_s28, 1  ;;  %p127_p8 = scmp.ne.s32.totalorder %s2816_s0, %s2812_s23 }
  0x19   : > { %s4083_s30 = smov (%p42_p5, %s40_s30), 0  ;;  %p128_p10 = scmp.eq.s32.totalorder %s4033_s29, 1 }
  0x1a   : > { %p2916_p9 = por %p122_p7, %p121_p6  ;;  %s108_s8 = ssub.s32 %s2828_s26, %s4083_s30 }
  0x1b   : > { %p2100_p11 = scmp.ge.s32.totalorder %s2832_s27, 1  ;;  %p109_p12 = scmp.eq.s32.totalorder %s108_s8, 0 }
  0x1c   : > { %p2925_p13 = por %p128_p10, %p127_p8  ;;  %p244_p0 = scmp.lt.s32.totalorder %s2832_s27, 3 }
  0x1d   : > { %s2931_s10 = scalar_select %p109_p12, %s2820_s24, %s111_s6  }
  0x1e   : > { %p245_p1 = pnand %p2100_p11, %p244_p0 }
  0x1f   : > { %p299_p2 = scmp.lt.s32.totalorder (!%p245_p1), %s2824_s25, 1  ;;  %s347_s11 = smul.u32 (!%p245_p1), 96, %s2824_s25 }
  0x20   : > { %248 = sbr.rel (%p245_p1) target bundleno = 664 (0x298), region = 28  ;;  %s484_s12 = sld [smem:[#allocation3]] (!%p245_p1) }
  0x21   : > { %s2117_s14 = sld [smem:[#allocation3 + $0x1]] (!%p245_p1)  ;;  %s2836_s20 = smov (!%p245_p1), 2  }
  0x22   : > { %s3155_s21 = sand.u32 (!%p245_p1), 1, %s2816_s0   ;;  %s2838_s8 = smov (!%p245_p1), [#allocation4]  }
  0x23   : > { %s3158_s22 = scalar_lea.vmem (!%p245_p1), [#allocation8], %s3155_s21 }
  0x25   : > { %v348_v0 = vlaneseq  ;;  %v2835_v1 = vmov 0.0   ;;  %s300_s13 = scalar_select %p299_p2, %s2824_s25, 1  ;;  %v2940_v3 = vstv %s347_s11 }
  0x26   : > { %2320 = vmatprep.subr.mxu1 %v2835_v1  ;;  %2293 = vmatprep.subr.mxu0 %v2835_v1  ;;  %v2971_v19 = vstv %s484_s12  ;;  %s2101_s12 = sshll.u32 %s3155_s21, 2 }
  0x27   : > { %v2938_v2 = vshrl.u32 %v348_v0, 7  ;;  %v2942_v4 = vand.u32 127, %v348_v0  ;;  %s301_s15 = smul.u32 12, %s300_s13  ;;  %v2974_v20 = vstv %s2117_s14  ;;  %s3853_s13 = scalar_lea.vmem [#allocation4], %s2101_s12 }
  0x28   : > { %342 = vst [vmem:[%s3853_s13] sm:$0xf] %v2835_v1  ;;  %s3898_s14 = scalar_lea.vmem [#allocation6], %s2101_s12 }
  0x29   : > { %v2946_v5 = vadd.s32 %v2940_v3, %v2938_v2  ;;  %v351_v6 = vadd.s32 16, %v2938_v2  ;;  %v350_v7 = vadd.s32 8, %v2938_v2  ;;  %v352_v8 = vadd.s32 24, %v2938_v2  ;;  %p306_p3 = scmp.lt.s32.totalorder %s301_s15, 12  ;;  %343 = vst [vmem:[%s3898_s14] sm:$0xf] %v2835_v1 }
  0x2a   : > { %v353_v9 = vadd.s32 32, %v2938_v2  ;;  %v354_v13 = vadd.s32 40, %v2938_v2  ;;  %v355_v24 = vadd.s32 48, %v2938_v2  ;;  %v356_v37 = vadd.s32 56, %v2938_v2 }
  0x2b   : > { %v376_v10 = vmul.u32 2, %v2946_v5  ;;  %v2954_v11 = vadd.s32 %v2940_v3, %v351_v6  ;;  %v2957_v12 = vadd.s32 %v2940_v3, %v350_v7  ;;  %v2961_v14 = vadd.s32 %v2940_v3, %v352_v8  ;;  %s4085_s15 = smov (!%p306_p3, %s301_s15), 12 }
  0x2c   : > { %v2969_v18 = vadd.s32 %v2940_v3, %v353_v9  ;;  %s2103_s16 = sshll.u32 %s4085_s15, 3  ;;  %v2979_v23 = vadd.s32 %v2940_v3, %v354_v13  ;;  %v3010_v35 = vadd.s32 %v2940_v3, %v355_v24  ;;  %v3044_v47 = vadd.s32 %v2940_v3, %v356_v37  ;;  %s4034_s15 = sshll.u32 %s2824_s25, 6 }
  0x2d   : > { %v388_v15 = vadd.s32 %v376_v10, %v2942_v4  ;;  %v378_v16 = vmul.u32 2, %v2954_v11  ;;  %v377_v17 = vmul.u32 2, %v2957_v12  ;;  %s2986_s19 = scalar_lea.vmem %s4019_s1, %s2103_s16  ;;  %v357_v50 = vadd.s32 64, %v2938_v2  ;;  %s3168_s11 = scalar_lea.vmem %s4020_s2, %s2103_s16 }
  0x2e   : > { %v379_v22 = vmul.u32 2, %v2961_v14  ;;  %v472_v25 = vld [vmem:[%s2986_s19] sm:$0xff]  ;;  %v380_v27 = vmul.u32 2, %v2969_v18  ;;  %v474_v28 = vld [vmem:[%s2986_s19 + $0x10] sm:$0xff]  ;;  %v473_v29 = vld [vmem:[%s2986_s19 + $0x8] sm:$0xff]  ;;  %v358_v56 = vadd.s32 72, %v2938_v2 }
  0x2f   : > { %v390_v21 = vadd.s32 %v378_v16, %v2942_v4  ;;  %vm400_vm0 = vcmp.lt.s32.totalorder %v388_v15, 203  ;;  %v389_v26 = vadd.s32 %v377_v17, %v2942_v4  ;;  %vm536_vm1 = vcmp.eq.s32.totalorder %v472_v25, %v2974_v20  ;;  %v475_v34 = vld [vmem:[%s2986_s19 + $0x18] sm:$0xff]  ;;  %v476_v40 = vld [vmem:[%s2986_s19 + $0x20] sm:$0xff]  ;;  %v477_v43 = vld [vmem:[%s2986_s19 + $0x28] sm:$0xff]  ;;  %s1934_s16 = sshll.u32 %s3853_s13, 4  ;;  %s1935_s16 = int_to_ptr.vmem [resolvable:$true] %s1934_s16 }
  0x30   : > { %vm486_vm2 = vcmp.eq.s32.totalorder %v472_v25, %v2971_v19  ;;  %vm548_vm4 = vmand %vm536_vm1, %vm400_vm0  ;;  %vm538_vm5 = vcmp.eq.s32.totalorder %v474_v28, %v2974_v20  ;;  %v391_v30 = vadd.s32 %v379_v22, %v2942_v4  ;;  %v381_v31 = vmul.u32 2, %v2979_v23  ;;  %v478_v49 = vld [vmem:[%s2986_s19 + $0x30] sm:$0xff]  ;;  %v479_v54 = vld [vmem:[%s2986_s19 + $0x38] sm:$0xff]  ;;  %s2698_s6 = scalar_lea.vmem %s1935_s16, 64 }
  0x31   : > { %vm402_vm3 = vcmp.lt.s32.totalorder %v390_v21, 203  ;;  %v2118_v32 = vsel %vm548_vm4, 1.0, %v2835_v1  ;;  %vm3002_vm6 = vmand %vm486_vm2, %vm400_vm0  ;;  %vm488_vm7 = vcmp.eq.s32.totalorder %v474_v28, %v2971_v19  ;;  %vm487_vm8 = vcmp.eq.s32.totalorder %v473_v29, %v2971_v19  ;;  %v480_v61 = vld [vmem:[%s2986_s19 + $0x40] sm:$0xff]  ;;  %v481_v9 = vld [vmem:[%s2986_s19 + $0x48] sm:$0xff]  ;;  %p2699_p4 = scmp.ne.s32.totalorder %s1935_s16, %s2698_s6 }
  0x32   : > { %596 = vrot.lane.b32.xlu0 %v2118_v32, %s2836_s20  ;;  %vm550_vm9 = vmand %vm538_vm5, %vm402_vm3  ;;  %vm401_vm10 = vcmp.lt.s32.totalorder %v389_v26, 203  ;;  %vm537_vm11 = vcmp.eq.s32.totalorder %v473_v29, %v2974_v20  ;;  %v392_v36 = vadd.s32 %v380_v27, %v2942_v4  ;;  %vm489_vm13 = vcmp.eq.s32.totalorder %v475_v34, %v2971_v19  ;;  %v482_v22 = vld [vmem:[%s2986_s19 + $0x50] sm:$0xff]  ;;  %v421_v37 = vld [vmem:[%s3168_s11 + $0x48] sm:$0xff] }
  0x33   : > { %v2120_v38 = vsel %vm550_vm9, 1.0, %v2835_v1  ;;  %vm3019_vm12 = vmand %vm488_vm7, %vm402_vm3  ;;  %vm403_vm15 = vcmp.lt.s32.totalorder %v391_v30, 203  ;;  %vm539_vm0 = vcmp.eq.s32.totalorder %v475_v34, %v2974_v20  ;;  %v393_v42 = vadd.s32 %v381_v31, %v2942_v4  ;;  %v483_v30 = vld [vmem:[%s2986_s19 + $0x58] sm:$0xff]  ;;  %s1932_s19 = scalar_lea.hbm %s4021_s3, %s4034_s15  ;;  %p2700_p5 = pnand %p2699_p4, %p2916_p9 }
  0x34   : > { %600 = vrot.lane.b32.xlu1 %v2120_v38, %s2836_s20  ;;  %vm3028_vm14 = vmand %vm487_vm8, %vm401_vm10  ;;  %vm490_vm2 = vcmp.eq.s32.totalorder %v476_v40, %v2971_v19  ;;  %v382_v44 = vmul.u32 2, %v3010_v35  ;;  %vm404_vm4 = vcmp.lt.s32.totalorder %v392_v36, 203  ;;  %vm540_vm5 = vcmp.eq.s32.totalorder %v476_v40, %v2974_v20 }
  0x35   : > { %vm549_vm1 = vmand %vm537_vm11, %vm401_vm10  ;;  %vm491_vm8 = vcmp.eq.s32.totalorder %v477_v43, %v2971_v19  ;;  %vm405_vm10 = vcmp.lt.s32.totalorder %v393_v42, 203  ;;  %vm541_vm11 = vcmp.eq.s32.totalorder %v477_v43, %v2974_v20  ;;  %v383_v53 = vmul.u32 2, %v3044_v47  ;;  %v420_v43 = vld [vmem:[%s3168_s11 + $0x40] sm:$0xff]  ;;  %p2701_p6 = pneg %p2700_p5 }
  0x36   : > { %v2119_v45 = vsel %vm549_vm1, 1.0, %v2835_v1  ;;  %vm3038_vm3 = vmand %vm489_vm13, %vm403_vm15  ;;  %v394_v48 = vadd.s32 %v382_v44, %v2942_v4  ;;  %v3066_v55 = vadd.s32 %v2940_v3, %v357_v50  ;;  %v3085_v62 = vadd.s32 %v2940_v3, %v358_v56  ;;  %v419_v44 = vld [vmem:[%s3168_s11 + $0x38] sm:$0xff] }
  0x37   : > { %598 = vrot.lane.b32.xlu0 %v2119_v45, %s2836_s20  ;;  %vm551_vm7 = vmand %vm539_vm0, %vm403_vm15  ;;  %vm492_vm15 = vcmp.eq.s32.totalorder %v478_v49, %v2971_v19  ;;  %v395_v59 = vadd.s32 %v383_v53, %v2942_v4  ;;  %v359_v63 = vadd.s32 80, %v2938_v2  ;;  %v4049_v6 = vmov 0 }
  0x38   : > { %v2121_v51 = vsel %vm551_vm7, 1.0, %v2835_v1  ;;  %vm3055_vm9 = vmand %vm490_vm2, %vm404_vm4  ;;  %vm406_vm1 = vcmp.lt.s32.totalorder %v394_v48, 203  ;;  %vm542_vm2 = vcmp.eq.s32.totalorder %v478_v49, %v2974_v20  ;;  %v384_v60 = vmul.u32 2, %v3066_v55  ;;  %v414_v49 = vld [vmem:[%s3168_s11 + $0x10] sm:$0xff] }
  0x39   : > { %602 = vrot.lane.b32.xlu1 %v2121_v51, %s2836_s20  ;;  %vm552_vm13 = vmand %vm540_vm5, %vm404_vm4  ;;  %vm493_vm5 = vcmp.eq.s32.totalorder %v479_v54, %v2971_v19  ;;  %v385_v8 = vmul.u32 2, %v3085_v62  ;;  %v372_v10 = vadd.s32 %v2940_v3, %v359_v63  ;;  %v4051_v15 = vmov 0 }
  0x3a   : > { %v2122_v57 = vsel %vm552_vm13, 1.0, %v2835_v1  ;;  %vm3073_vm0 = vmand %vm491_vm8, %vm405_vm10  ;;  %vm407_vm8 = vcmp.lt.s32.totalorder %v395_v59, 203  ;;  %v396_v7 = vadd.s32 %v384_v60, %v2942_v4  ;;  %v360_v16 = vadd.s32 88, %v2938_v2 }
  0x3b   : > { %604 = vrot.lane.b32.xlu0 %v2122_v57, %s2836_s20  ;;  %vm553_vm4 = vmand %vm541_vm11, %vm405_vm10  ;;  %vm543_vm10 = vcmp.eq.s32.totalorder %v479_v54, %v2974_v20  ;;  %v397_v17 = vadd.s32 %v385_v8, %v2942_v4  ;;  %vm495_vm13 = vcmp.eq.s32.totalorder %v481_v9, %v2971_v19  ;;  %v386_v21 = vmul.u32 2, %v372_v10 }
  0x3c   : > { %v2123_v0 = vsel %vm553_vm4, 1.0, %v2835_v1  ;;  %vm3092_vm7 = vmand %vm492_vm15, %vm406_vm1  ;;  %vm408_vm4 = vcmp.lt.s32.totalorder %v396_v7, 203  ;;  %v4054_v25 = vmov 0  ;;  %v373_v2 = vadd.s32 %v2940_v3, %v360_v16  ;;  %v417_v7 = vld [vmem:[%s3168_s11 + $0x28] sm:$0xff] }
  0x3d   : > { %v4050_v6 = vsel %vm3092_vm7, 4294967295, %v4049_v6  ;;  %606 = vrot.lane.b32.xlu1 %v2123_v0, %s2836_s20  ;;  %vm554_vm11 = vmand %vm542_vm2, %vm406_vm1  ;;  %vm544_vm1 = vcmp.eq.s32.totalorder %v480_v61, %v2974_v20  ;;  %v398_v26 = vadd.s32 %v386_v21, %v2942_v4  ;;  %vm496_vm7 = vcmp.eq.s32.totalorder %v482_v22, %v2971_v19  ;;  %v416_v21 = vld [vmem:[%s3168_s11 + $0x20] sm:$0xff] }
  0x3e   : > { %v2124_v13 = vsel %vm554_vm11, 1.0, %v2835_v1  ;;  %vm3107_vm15 = vmand %vm493_vm5, %vm407_vm8  ;;  %vm4053_vm5 = vcmp.eq.s32.totalorder %v480_v61, %v2971_v19  ;;  %v4056_v28 = vmov 0  ;;  %v387_v29 = vmul.u32 2, %v373_v2 }
  0x3f   : > { %v4052_v15 = vsel %vm3107_vm15, 4294967295, %v4051_v15  ;;  %608 = vrot.lane.b32.xlu0 %v2124_v13, %s2836_s20  ;;  %vm555_vm2 = vmand %vm543_vm10, %vm407_vm8  ;;  %vm545_vm15 = vcmp.eq.s32.totalorder %v481_v9, %v2974_v20  ;;  %vm409_vm10 = vcmp.lt.s32.totalorder %v397_v17, 203  ;;  %v2106_v33 = vsel %vm3028_vm14, 1.0, %v2835_v1 }
  0x40   : > { %v2125_v24 = vsel %vm555_vm2, 1.0, %v2835_v1  ;;  %vm3120_vm11 = vmand %vm4053_vm5, %vm408_vm4  ;;  %vm546_vm5 = vcmp.eq.s32.totalorder %v482_v22, %v2974_v20  ;;  %v399_v32 = vadd.s32 %v387_v29, %v2942_v4  ;;  %vm4063_vm14 = vnez %v4052_v15 }
  0x41   : > { %v4055_v25 = vsel %vm3120_vm11, 4294967295, %v4054_v25  ;;  %610 = vrot.lane.b32.xlu1 %v2125_v24, %s2836_s20  ;;  %vm556_vm8 = vmand %vm544_vm1, %vm408_vm4  ;;  %vm410_vm1 = vcmp.lt.s32.totalorder %v398_v26, 203  ;;  %v2112_v58 = vsel %vm4063_vm14, 1.0, %v2835_v1 }
  0x42   : > { %v2126_v27 = vsel %vm556_vm8, 1.0, %v2835_v1  ;;  %vm3130_vm2 = vmand %vm495_vm13, %vm409_vm10  ;;  %vm497_vm13 = vcmp.eq.s32.totalorder %v483_v30, %v2971_v19  ;;  %v423_v19 = vld [vmem:[%s3168_s11 + $0x58] sm:$0xff] }
  0x43   : > { %v4057_v28 = vsel %vm3130_vm2, 4294967295, %v4056_v28  ;;  %612 = vrot.lane.b32.xlu0 %v2126_v27, %s2836_s20  ;;  %vm557_vm11 = vmand %vm545_vm15, %vm409_vm10  ;;  %vm547_vm2 = vcmp.eq.s32.totalorder %v483_v30, %v2974_v20  ;;  %vm411_vm15 = vcmp.lt.s32.totalorder %v399_v32, 203  ;;  %vm344_vm10 = vcmask 24576   ;;  %v422_v20 = vld [vmem:[%s3168_s11 + $0x50] sm:$0xff]  ;;  %v415_v30 = vld [vmem:[%s3168_s11 + $0x18] sm:$0xff] }
  0x44   : > { %v2127_v3 = vsel %vm557_vm11, 1.0, %v2835_v1  ;;  %vm3138_vm4 = vmand %vm496_vm7, %vm410_vm1  ;;  %345 = vst.msk [vmem:[%s3158_s22] sm:$0x1] %vm344_vm10, %v2835_v1 }
  0x45   : > { %614 = vrot.lane.b32.xlu1 %v2127_v3, %s2836_s20  ;;  %vm558_vm8 = vmand %vm546_vm5, %vm410_vm1  ;;  %vm434_vm5 = vcmp.lt.s32.totalorder %v372_v10, 102  ;;  %vm431_vm1 = vcmp.lt.s32.totalorder %v3044_v47, 102 }
  0x46   : > { %v2128_v34 = vsel %vm558_vm8, 1.0, %v2835_v1  ;;  %vm3148_vm11 = vmand %vm497_vm13, %vm411_vm15  ;;  %vm432_vm13 = vcmp.lt.s32.totalorder %v3066_v55, 102  ;;  %vm435_vm8 = vcmp.lt.s32.totalorder %v373_v2, 102  ;;  %v3178_v40 = vsel %vm434_vm5, %v422_v20, 0.0  ;;  %v413_v20 = vld [vmem:[%s3168_s11 + $0x8] sm:$0xff] }
  0x47   : > { %616 = vrot.lane.b32.xlu0 %v2128_v34, %s2836_s20  ;;  %vm559_vm7 = vmand %vm547_vm2, %vm411_vm15  ;;  %vm433_vm2 = vcmp.lt.s32.totalorder %v3085_v62, 102  ;;  %v3176_v38 = vsel %vm435_vm8, %v423_v19, 0.0  ;;  %v3188_v48 = vand.u32 4294901760, %v3178_v40  ;;  %vm426_vm15 = vcmp.lt.s32.totalorder %v2954_v11, 102  ;;  %v418_v11 = vld [vmem:[%s3168_s11 + $0x30] sm:$0xff] }
  0x48   : > { %v2129_v4 = vsel %vm559_vm7, 1.0, %v2835_v1  ;;  %v3180_v42 = vsel %vm433_vm2, %v421_v37, 0.0  ;;  %v3185_v45 = vand.u32 4294901760, %v3176_v38  ;;  %v3195_v51 = vsel %vm432_vm13, %v420_v43, 0.0 }
  0x49   : > { %618 = vrot.lane.b32.xlu1 %v2129_v4, %s2836_s20  ;;  %v3193_v50 = vand.u32 4294901760, %v3180_v42  ;;  %v3199_v53 = vsel %vm431_vm1, %v419_v44, 0.0  ;;  %vm430_vm7 = vcmp.lt.s32.totalorder %v3010_v35, 102  ;;  %v3208_v55 = vsub.f32 %v3178_v40, %v3188_v48  ;;  %s1912_s20 = scalar_lea.sflag [#allocation5], %s3155_s21 }
  0x4a   : > { %v3204_v54 = vsub.f32 %v3176_v38, %v3185_v45  ;;  %2294 = vmatpush3.msra.mxu0 %v3185_v45  ;;  %v3217_v47 = vand.u32 4294901760, %v3195_v51  ;;  %v3220_v57 = vsel %vm426_vm15, %v414_v49, 0.0  ;;  %v3225_v61 = vand.u32 4294901760, %v3199_v53 }
  0x4b   : > { %v3214_v56 = vsub.f32 %v3180_v42, %v3193_v50  ;;  %2295 = vmatprep.subr.mxu0 %v2835_v1  ;;  %v787_v60 = vand.u32 4294901760, %v3208_v55  ;;  %vm429_vm2 = vcmp.lt.s32.totalorder %v2979_v23, 102  ;;  %v3236_v0 = vsel %vm430_vm7, %v418_v11, 0.0 }
  0x4c   : > { %v780_v59 = vand.u32 4294901760, %v3204_v54  ;;  %2296 = vmatpush3.msra.mxu0 %v3188_v48  ;;  %v3232_v63 = vsub.f32 %v3195_v51, %v3217_v47  ;;  %vm428_vm5 = vcmp.lt.s32.totalorder %v2969_v18, 102  ;;  %v3249_v10 = vsub.f32 %v3199_v53, %v3225_v61 }
  0x4d   : > { %v794_v62 = vand.u32 4294901760, %v3214_v56  ;;  %2297 = vmatprep.subr.mxu0 %v2835_v1  ;;  %v788_v9 = vsub.f32 %v3208_v55, %v787_v60  ;;  %v3253_v35 = vand.u32 4294901760, %v3220_v57  ;;  %v3260_v17 = vand.u32 4294901760, %v3236_v0 }
  0x4e   : > { %v781_v8 = vsub.f32 %v3204_v54, %v780_v59  ;;  %2298 = vmatpush3.msra.mxu0 %v3193_v50  ;;  %v4032_v16 = vand.u32 4294901760, %v3232_v63  ;;  %v4031_v2 = vand.u32 4294901760, %v3249_v10  ;;  %v3267_v26 = vsel %vm429_vm2, %v417_v7, 0.0 }
  0x4f   : > { %v795_v13 = vsub.f32 %v3214_v56, %v794_v62  ;;  %2299 = vmatprep.subr.mxu0 %v2835_v1  ;;  %v789_v24 = vand.u32 4294901760, %v788_v9  ;;  %vm427_vm1 = vcmp.lt.s32.totalorder %v2961_v14, 102  ;;  %v3276_v29 = vsub.f32 %v3236_v0, %v3260_v17 }
  0x50   : > { %v782_v22 = vand.u32 4294901760, %v781_v8  ;;  %2300 = vmatpush3.msra.mxu0 %v3217_v47  ;;  %v802_v27 = vsub.f32 %v3232_v63, %v4032_v16  ;;  %v809_v3 = vsub.f32 %v3249_v10, %v4031_v2  ;;  %v3284_v32 = vand.u32 4294901760, %v3267_v26 }
  0x51   : > { %2301 = vmatprep.subr.mxu0 %v2835_v1  ;;  %v796_v23 = vand.u32 4294901760, %v795_v13  ;;  %v3288_v34 = vsel %vm428_vm5, %v416_v21, 0.0  ;;  %vm425_vm13 = vcmp.lt.s32.totalorder %v2957_v12, 102  ;;  %v4030_v4 = vand.u32 4294901760, %v3276_v29 }
  0x52   : > { %2321 = vmatpush3.msra.mxu1 %v782_v22  ;;  %2302 = vmatpush3.msra.mxu0 %v3225_v61  ;;  %v3295_v19 = vand.u32 4294901760, %v3288_v34  ;;  %v803_v37 = vand.u32 4294901760, %v802_v27  ;;  %v3301_v18 = vsub.f32 %v3267_v26, %v3284_v32  ;;  %v3305_v43 = vsel %vm427_vm1, %v415_v30, 0.0 }
  0x53   : > { %2322 = vmatprep.subr.mxu1 %v2835_v1  ;;  %2303 = vmatprep.subr.mxu0 %v2835_v1  ;;  %v3310_v44 = vsub.f32 %v3220_v57, %v3253_v35  ;;  %v816_v49 = vsub.f32 %v3276_v29, %v4030_v4  ;;  %v3321_v14 = vand.u32 4294901760, %v3305_v43  ;;  %v810_v7 = vand.u32 4294901760, %v809_v3 }
  0x54   : > { %2323 = vmatpush3.msra.mxu1 %v789_v24  ;;  %2304 = vmatpush3.msra.mxu0 %v3260_v17  ;;  %v3318_v11 = vsub.f32 %v3288_v34, %v3295_v19  ;;  %v4025_v8 = vand.u32 4294901760, %v3301_v18  ;;  %v3328_v9 = vsel %vm425_vm13, %v413_v20, 0.0  ;;  %v412_v24 = vld [vmem:[%s3168_s11] sm:$0xff]  ;;  %vm424_vm8 = vcmp.lt.s32.totalorder %v2946_v5, 102  ;;  %s2702_s11 = sshll.u32 %s2838_s8, 4  ;;  %s2703_s11 = int_to_ptr.vmem [resolvable:$false] %s2702_s11 }
  0x55   : > { %2324 = vmatprep.subr.mxu1 %v2835_v1  ;;  %2305 = vmatprep.subr.mxu0 %v2835_v1  ;;  %v3334_v21 = vsub.f32 %v3305_v43, %v3321_v14  ;;  %v3337_v22 = vand.u32 4294901760, %v3328_v9  ;;  %v817_v12 = vand.u32 4294901760, %v816_v49  ;;  %v4027_v30 = vand.u32 4294901760, %v3310_v44  ;;  %s2704_s12 = scalar_lea.vmem %s2703_s11, 128  ;;  %p2705_p7 = scmp.lt.s32.totalorder %s1935_s16, %s2703_s11 }
  0x56   : > { %2325 = vmatpush3.msra.mxu1 %v796_v23  ;;  %2306 = vmatpush3.msra.mxu0 %v3284_v32  ;;  %v4024_v13 = vand.u32 4294901760, %v3318_v11  ;;  %v823_v27 = vsub.f32 %v3301_v18, %v4025_v8  ;;  %vm632_vm15 = vcmask 15360   ;;  %vm2837_vm7 = vmmov 0   ;;  %p2706_p8 = scmp.lt.s32.totalorder %s2704_s12, %s2698_s6 }
  0x57   : > { %2326 = vmatprep.subr.mxu1 %v2835_v1  ;;  %2307 = vmatprep.subr.mxu0 %v2835_v1  ;;  %v4029_v3 = vand.u32 4294901760, %v3334_v21  ;;  %v3354_v5 = vsub.f32 %v3328_v9, %v3337_v22  ;;  %v2109_v4 = vsel %vm3055_vm9, 1.0, %v2835_v1  ;;  %vm4065_vm9 = vnez %v4057_v28 }
  0x58   : > { %2327 = vmatpush3.msra.mxu1 %v803_v37  ;;  %2308 = vmatpush3.msra.mxu0 %v3295_v19  ;;  %v830_v23 = vsub.f32 %v3318_v11, %v4024_v13  ;;  %v824_v20 = vand.u32 4294901760, %v823_v27  ;;  %v3358_v37 = vsel %vm424_vm8, %v412_v24, 0.0  ;;  %v2114_v15 = vsel %vm4065_vm9, 1.0, %v2835_v1  ;;  %p2707_p10 = por %p2706_p8, %p2705_p7 }
  0x59   : > { %2328 = vmatprep.subr.mxu1 %v2835_v1  ;;  %2309 = vmatprep.subr.mxu0 %v2835_v1  ;;  %v837_v49 = vsub.f32 %v3334_v21, %v4029_v3  ;;  %v4026_v13 = vand.u32 4294901760, %v3354_v5  ;;  %v3373_v24 = vand.u32 4294901760, %v3358_v37 }
  0x5a   : > { %2329 = vmatpush3.msra.mxu1 %v810_v7  ;;  %2310 = vmatpush3.msra.mxu0 %v3321_v14  ;;  %v831_v8 = vand.u32 4294901760, %v830_v23  ;;  %v844_v7 = vsub.f32 %v3310_v44, %v4027_v30  ;;  %p2708_p11 = pnand %p2707_p10, %p2701_p6 }
  0x5b   : > { %2330 = vmatprep.subr.mxu1 %v2835_v1  ;;  %2311 = vmatprep.subr.mxu0 %v2835_v1  ;;  %v838_v27 = vand.u32 4294901760, %v837_v49 }
  0x5c   : > { %2331 = vmatpush3.msra.mxu1 %v817_v12  ;;  %2312 = vmatpush3.msra.mxu0 %v3253_v35  ;;  %v851_v12 = vsub.f32 %v3354_v5, %v4026_v13  ;;  %v845_v23 = vand.u32 4294901760, %v844_v7  ;;  %v2107_v13 = vsel %vm3019_vm12, 1.0, %v2835_v1  ;;  %vm4062_vm12 = vnez %v4050_v6 }
  0x5d   : > { %2332 = vmatprep.subr.mxu1 %v2835_v1  ;;  %2313 = vmatprep.subr.mxu0 %v2835_v1  ;;  %v2111_v52 = vsel %vm4062_vm12, 1.0, %v2835_v1 }
  0x5e   : > { %2333 = vmatpush3.msra.mxu1 %v824_v20  ;;  %2314 = vmatpush3.msra.mxu0 %v3337_v22  ;;  %v852_v20 = vand.u32 4294901760, %v851_v12 }
  0x5f   : > { %2334 = vmatprep.subr.mxu1 %v2835_v1  ;;  %2315 = vmatprep.subr.mxu0 %v2835_v1 }
  0x60   : > { %2335 = vmatpush3.msra.mxu1 %v831_v8  ;;  %2316 = vmatpush3.msra.mxu0 %v3373_v24  ;;  %v3389_v8 = vsub.f32 %v3358_v37, %v3373_v24 }
  0x61   : > { %2336 = vmatprep.subr.mxu1 %v2835_v1  ;;  %2347 = vmatprep.subr.mxu0 %v2835_v1 }
  0x62   : > { %2337 = vmatpush3.msra.mxu1 %v838_v27  ;;  %v4028_v49 = vand.u32 4294901760, %v3389_v8  ;;  %v2105_v27 = vsel %vm3002_vm6, 1.0, %v2835_v1  ;;  %2344 = vmatprep.mubr.msk.f32.mxu1 %vm2837_vm7, %v2835_v1  ;;  %vm1878_vm6 = vcmask 31744  }
  0x63   : > { %2338 = vmatprep.subr.mxu1 %v2835_v1  ;;  %2317 = vmatprep.mubr.msk.f32.mxu0 %vm2837_vm7, %v2835_v1 }
  0x64   : > { %2339 = vmatpush3.msra.mxu1 %v845_v23  ;;  %v858_v7 = vsub.f32 %v3389_v8, %v4028_v49 }
  0x65   : > { %2340 = vmatprep.subr.mxu1 %v2835_v1 }
  0x66   : > { %2341 = vmatpush3.msra.mxu1 %v852_v20  ;;  %v859_v12 = vand.u32 4294901760, %v858_v7 }
  0x67   : > { %2342 = vmatprep.subr.mxu1 %v2835_v1 }
  0x68   : > { %2343 = vmatpush3.msra.mxu1 %v859_v12 }
  0x69   : > { %2374 = vmatprep.subr.mxu1 %v2835_v1 }
  0xa4   : > { %v597_v23 = vpop.permute.xlu0 %596 }
  0xa5   : > { %v633_v20 = vsel %vm632_vm15, %v2105_v27, %v597_v23  ;;  %v2108_v27 = vsel %vm3038_vm3, 1.0, %v2835_v1  ;;  %vm4064_vm3 = vnez %v4055_v25  ;;  %v2115_v25 = vsel %vm3138_vm4, 1.0, %v2835_v1 }
  0xa6   : > { %646 = vxpose.xlu0.b32.start [1/12] (short) (narrow) %v633_v20, 8  ;;  %v601_v30 = vpop.permute.xlu1 %600  ;;  %v1879_v23 = vsel %vm1878_vm6, %v633_v20, 0.0  ;;  %v2110_v20 = vsel %vm3073_vm0, 1.0, %v2835_v1  ;;  %v2113_v6 = vsel %vm4064_vm3, 1.0, %v2835_v1  ;;  %vm678_vm0 = vcmask 785408  }
  0xa7   : > { %v635_v39 = vsel %vm632_vm15, %v2107_v13, %v601_v30 }
  0xa8   : > { %v1882_v3 = vsel %vm1878_vm6, %v635_v39, 0.0 }
  0xa9   : > { %v599_v7 = vpop.permute.xlu0 %598 }
  0xaa   : > { %v634_v12 = vsel %vm632_vm15, %v2106_v33, %v599_v7 }
  0xab   : > { %v1880_v41 = vsel %vm1878_vm6, %v634_v12, 0.0  ;;  %647 = vxpose.xlu0.b32.cont [2/12] (short) (narrow) %v634_v12, 8  ;;  %v603_v49 = vpop.permute.xlu1 %602 }
  0xac   : > { %v1881_v13 = vadd.f32 %v1880_v41, %v1879_v23  ;;  %v636_v30 = vsel %vm632_vm15, %v2108_v27, %v603_v49 }
  0xad   : > { %v605_v2 = vpop.permute.xlu0 %604  ;;  %v1884_v46 = vsel %vm1878_vm6, %v636_v30, 0.0 }
  0xae   : > { %v1883_v33 = vadd.f32 %v1882_v3, %v1881_v13  ;;  %v637_v7 = vsel %vm632_vm15, %v2109_v4, %v605_v2 }
  0xaf   : > { %648 = vxpose.xlu0.b32.cont [3/12] (short) (narrow) %v635_v39, 8  ;;  %v607_v12 = vpop.permute.xlu1 %606  ;;  %v1886_v16 = vsel %vm1878_vm6, %v637_v7, 0.0 }
  0xb0   : > { %v1885_v23 = vadd.f32 %v1884_v46, %v1883_v33  ;;  %v638_v49 = vsel %vm632_vm15, %v2110_v20, %v607_v12 }
  0xb1   : > { %v609_v27 = vpop.permute.xlu0 %608  ;;  %v1888_v41 = vsel %vm1878_vm6, %v638_v49, 0.0 }
  0xb2   : > { %v1887_v3 = vadd.f32 %v1886_v16, %v1885_v23  ;;  %v639_v2 = vsel %vm632_vm15, %v2111_v52, %v609_v27 }
  0xb3   : > { %649 = vxpose.xlu0.b32.cont [4/12] (short) (narrow) %v636_v30, 8  ;;  %v611_v4 = vpop.permute.xlu1 %610  ;;  %v1890_v39 = vsel %vm1878_vm6, %v639_v2, 0.0 }
  0xb4   : > { %v1889_v13 = vadd.f32 %v1888_v41, %v1887_v3  ;;  %v640_v46 = vsel %vm632_vm15, %v2112_v58, %v611_v4 }
  0xb5   : > { %v613_v20 = vpop.permute.xlu0 %612  ;;  %v1892_v33 = vsel %vm1878_vm6, %v640_v46, 0.0 }
  0xb6   : > { %v1891_v16 = vadd.f32 %v1890_v39, %v1889_v13  ;;  %v641_v30 = vsel %vm632_vm15, %v2113_v6, %v613_v20 }
  0xb7   : > { %650 = vxpose.xlu0.b32.cont [5/12] (short) (narrow) %v637_v7, 8  ;;  %v615_v12 = vpop.permute.xlu1 %614  ;;  %v1894_v52 = vsel %vm1878_vm6, %v641_v30, 0.0  ;;  %v2116_v7 = vsel %vm3148_vm11, 1.0, %v2835_v1 }
  0xb8   : > { %v1893_v23 = vadd.f32 %v1892_v33, %v1891_v16  ;;  %v642_v27 = vsel %vm632_vm15, %v2114_v15, %v615_v12 }
  0xb9   : > { %v617_v41 = vpop.permute.xlu0 %616  ;;  %v1896_v58 = vsel %vm1878_vm6, %v642_v27, 0.0 }
  0xba   : > { %v1895_v3 = vadd.f32 %v1894_v52, %v1893_v23  ;;  %v643_v28 = vsel %vm632_vm15, %v2115_v25, %v617_v41  ;;  %v1877_v52 = vld [vmem:[%s3158_s22] sm:$0x1] }
  0xbb   : > { %651 = vxpose.xlu0.b32.cont [6/12] (short) (narrow) %v638_v49, 8  ;;  %v1898_v4 = vsel %vm1878_vm6, %v643_v28, 0.0  ;;  %v619_v39 = vpop.permute.xlu1 %618 }
  0xbc   : > { %v1897_v31 = vadd.f32 %v1896_v58, %v1895_v3  ;;  %v644_v6 = vsel %vm632_vm15, %v2116_v7, %v619_v39  ;;  %v1278_v7 = vmul.f32 %v3288_v34, %v3288_v34  ;;  %v1277_v34 = vmul.f32 %v3305_v43, %v3305_v43 }
  0xbd   : > { %v1900_v20 = vsel %vm1878_vm6, %v644_v6, 0.0  ;;  %v1276_v43 = vmul.f32 %v3220_v57, %v3220_v57 }
  0xbe   : > { %v1899_v13 = vadd.f32 %v1898_v4, %v1897_v31  ;;  %v3643_v57 = vand.u32 4294901760, %v1277_v34 }
  0xbf   : > { %652 = vxpose.xlu0.b32.cont [7/12] (short) (narrow) %v639_v2, 8 }
  0xc0   : > { %v1901_v33 = vadd.f32 %v1900_v20, %v1899_v13 }
  0xc2   : > { %v1902_v15 = vrot.slane %v1901_v33, 4 }
  0xc3   : > { %653 = vxpose.xlu0.b32.cont [8/12] (short) (narrow) %v640_v46, 8 }
  0xc4   : > { %v1903_v16 = vadd.f32 %v1902_v15, %v1901_v33 }
  0xc6   : > { %v1904_v12 = vrot.slane %v1903_v16, 2 }
  0xc7   : > { %654 = vxpose.xlu0.b32.cont [9/12] (short) (narrow) %v641_v30, 8 }
  0xc8   : > { %v1905_v36 = vadd.f32 %v1904_v12, %v1903_v16  ;;  %v4071_v12 = vand.u32 4294901760, %v3334_v21 }
  0xca   : > { %v1906_v49 = vrot.slane %v1905_v36, 1 }
  0xcb   : > { %655 = vxpose.xlu0.b32.cont [10/12] (short) (narrow) %v642_v27, 8 }
  0xcc   : > { %v1907_v25 = vadd.f32 %v1906_v49, %v1905_v36 }
  0xce   : > { %v1908_v23 = vadd.f32 %v1907_v25, %v1877_v52 }
  0xcf   : > { %656 = vxpose.xlu0.b32.cont [11/12] (short) (narrow) %v643_v28, 8  ;;  %v1285_v28 = vmul.f32 %v3176_v38, %v3176_v38 }
  0xd0   : > { %1910 = vst.msk [vmem:[%s3158_s22] sm:$0x1] %vm344_vm10, %v1908_v23 }
  0xd1   : > { %v3537_v38 = vand.u32 4294901760, %v1285_v28 }
  0xd3   : > { %657 = vxpose.xlu0.b32.end [12/12] (short) (narrow) %v644_v6, 8 }
 0x123   : > { %v662_v41 = vpop.trf.xlu0 }
 0x124   : > { %v680_v58 = vsel %vm678_vm0, %v662_v41, 0  ;;  %v3681_v41 = vsub.f32 %v1277_v34, %v3643_v57 }
 0x125   : > { %v3463_v2 = vand.u32 4294901760, %v680_v58 }
 0x127   : > { %v3466_v46 = vsub.f32 %v680_v58, %v3463_v2  ;;  %2345 = vmatmul.mubr.f32.vlgmr.msra.gmra.mxu1 %v3463_v2 }
 0x128   : > { %2375 = vmatpush3.msra.mxu1 %v3185_v45  ;;  %2398 = vmatprep.mubr.msk.f32.mxu1 %vm2837_vm7, %v2835_v1 }
 0x129   : > { %2376 = vmatprep.subr.mxu1 %v2835_v1  ;;  %v3474_v30 = vand.u32 4294901760, %v3466_v46 }
 0x12a   : > { %2377 = vmatpush3.msra.mxu1 %v3188_v48 }
 0x12b   : > { %2378 = vmatprep.subr.mxu1 %v2835_v1  ;;  %v762_v27 = vsub.f32 %v3466_v46, %v3474_v30 }
 0x12c   : > { %2379 = vmatpush3.msra.mxu1 %v3193_v50 }
 0x12d   : > { %2380 = vmatprep.subr.mxu1 %v2835_v1  ;;  %v3482_v3 = vand.u32 4294901760, %v762_v27 }
 0x12e   : > { %2381 = vmatpush3.msra.mxu1 %v3217_v47 }
 0x12f   : > { %2382 = vmatprep.subr.mxu1 %v2835_v1  ;;  %2318 = vmatmul.mubr.f32.vlgmr.msra.gmra.mxu0 %v3482_v3 }
 0x130   : > { %2348 = vmatpush3.msra.mxu0 %v3204_v54  ;;  %2383 = vmatpush3.msra.mxu1 %v3225_v61 }
 0x131   : > { %2349 = vmatprep.subr.mxu0 %v2835_v1  ;;  %2384 = vmatprep.subr.mxu1 %v2835_v1 }
 0x132   : > { %2350 = vmatpush3.msra.mxu0 %v3208_v55  ;;  %2385 = vmatpush3.msra.mxu1 %v3260_v17 }
 0x133   : > { %2351 = vmatprep.subr.mxu0 %v2835_v1  ;;  %2386 = vmatprep.subr.mxu1 %v2835_v1 }
 0x134   : > { %2352 = vmatpush3.msra.mxu0 %v3214_v56  ;;  %2387 = vmatpush3.msra.mxu1 %v3284_v32 }
 0x135   : > { %2353 = vmatprep.subr.mxu0 %v2835_v1  ;;  %2388 = vmatprep.subr.mxu1 %v2835_v1 }
 0x136   : > { %2354 = vmatpush3.msra.mxu0 %v3232_v63  ;;  %2389 = vmatpush3.msra.mxu1 %v3295_v19 }
 0x137   : > { %2355 = vmatprep.subr.mxu0 %v2835_v1  ;;  %2390 = vmatprep.subr.mxu1 %v2835_v1 }
 0x138   : > { %2356 = vmatpush3.msra.mxu0 %v3249_v10  ;;  %2391 = vmatpush3.msra.mxu1 %v3321_v14 }
 0x139   : > { %2357 = vmatprep.subr.mxu0 %v2835_v1  ;;  %2392 = vmatprep.subr.mxu1 %v2835_v1 }
 0x13a   : > { %2358 = vmatpush3.msra.mxu0 %v3276_v29  ;;  %2393 = vmatpush3.msra.mxu1 %v3253_v35 }
 0x13b   : > { %2359 = vmatprep.subr.mxu0 %v2835_v1  ;;  %2394 = vmatprep.subr.mxu1 %v2835_v1 }
 0x13c   : > { %2360 = vmatpush3.msra.mxu0 %v3301_v18  ;;  %2395 = vmatpush3.msra.mxu1 %v3337_v22 }
 0x13d   : > { %2361 = vmatprep.subr.mxu0 %v2835_v1  ;;  %2396 = vmatprep.subr.mxu1 %v2835_v1 }
 0x13e   : > { %2362 = vmatpush3.msra.mxu0 %v3318_v11  ;;  %2397 = vmatpush3.msra.mxu1 %v3373_v24 }
 0x13f   : > { %2363 = vmatprep.subr.mxu0 %v2835_v1  ;;  %2399 = vmatmul.mubr.f32.vlgmr.msra.gmra.mxu1 %v3474_v30 }
 0x140   : > { %2428 = vmatprep.subr.mxu1 %v2835_v1  ;;  %2364 = vmatpush3.msra.mxu0 %v3334_v21 }
 0x141   : > { %2429 = vmatpush3.msra.mxu1 %v3185_v45  ;;  %2365 = vmatprep.subr.mxu0 %v2835_v1  ;;  %v1284_v45 = vmul.f32 %v3178_v40, %v3178_v40 }
 0x142   : > { %2430 = vmatprep.subr.mxu1 %v2835_v1  ;;  %2366 = vmatpush3.msra.mxu0 %v3310_v44 }
 0x143   : > { %2431 = vmatpush3.msra.mxu1 %v3188_v48  ;;  %2367 = vmatprep.subr.mxu0 %v2835_v1  ;;  %v1283_v48 = vmul.f32 %v3180_v42, %v3180_v42  ;;  %v3546_v40 = vand.u32 4294901760, %v1284_v45 }
 0x144   : > { %2432 = vmatprep.subr.mxu1 %v2835_v1  ;;  %2368 = vmatpush3.msra.mxu0 %v3354_v5 }
 0x145   : > { %2433 = vmatpush3.msra.mxu1 %v3193_v50  ;;  %2369 = vmatprep.subr.mxu0 %v2835_v1  ;;  %v1282_v50 = vmul.f32 %v3195_v51, %v3195_v51  ;;  %v3555_v42 = vand.u32 4294901760, %v1283_v48  ;;  %v1281_v51 = vmul.f32 %v3199_v53, %v3199_v53  ;;  %v3573_v55 = vsub.f32 %v1284_v45, %v3546_v40 }
 0x146   : > { %2434 = vmatprep.subr.mxu1 %v2835_v1  ;;  %2370 = vmatpush3.msra.mxu0 %v3389_v8  ;;  %v4066_v53 = vand.u32 4294901760, %v3232_v63 }
 0x147   : > { %2371 = vmatprep.mubr.msk.f32.mxu0 %vm2837_vm7, %v2835_v1  ;;  %2435 = vmatpush3.msra.mxu1 %v3217_v47  ;;  %v3561_v47 = vsub.f32 %v1285_v28, %v3537_v38  ;;  %v3567_v54 = vand.u32 4294901760, %v1282_v50  ;;  %v3584_v56 = vsub.f32 %v1283_v48, %v3555_v42  ;;  %v1391_v63 = vand.u32 4294901760, %v3573_v55 }
 0x148   : > { %2372 = vmatmul.mubr.f32.vlgmr.msra.gmra.mxu0 %v3466_v46  ;;  %2401 = vmatprep.subr.mxu0 %v2835_v1 }
 0x149   : > { %2436 = vmatprep.subr.mxu1 %v2835_v1  ;;  %2402 = vmatpush3.msra.mxu0 %v780_v59  ;;  %v1280_v59 = vmul.f32 %v3236_v0, %v3236_v0  ;;  %v4067_v0 = vand.u32 4294901760, %v3249_v10  ;;  %v1392_v39 = vsub.f32 %v3573_v55, %v1391_v63 }
 0x14a   : > { %2437 = vmatpush3.msra.mxu1 %v3225_v61  ;;  %2403 = vmatprep.subr.mxu0 %v2835_v1  ;;  %v3586_v61 = vand.u32 4294901760, %v1281_v51 }
 0x14b   : > { %2438 = vmatprep.subr.mxu1 %v2835_v1  ;;  %2404 = vmatpush3.msra.mxu0 %v787_v60  ;;  %v1384_v60 = vand.u32 4294901760, %v3561_v47  ;;  %v1393_v15 = vand.u32 4294901760, %v1392_v39 }
 0x14c   : > { %2439 = vmatpush3.msra.mxu1 %v3260_v17  ;;  %2405 = vmatprep.subr.mxu0 %v2835_v1  ;;  %v3597_v17 = vsub.f32 %v1282_v50, %v3567_v54  ;;  %v4074_v50 = vand.u32 4294901760, %v3389_v8 }
 0x14d   : > { %2440 = vmatprep.subr.mxu1 %v2835_v1  ;;  %2406 = vmatpush3.msra.mxu0 %v794_v62  ;;  %v1279_v62 = vmul.f32 %v3267_v26, %v3267_v26  ;;  %v4068_v26 = vand.u32 4294901760, %v3276_v29  ;;  %v1385_v10 = vsub.f32 %v3561_v47, %v1384_v60  ;;  %v4069_v29 = vand.u32 4294901760, %v3301_v18 }
 0x14e   : > { %2441 = vmatpush3.msra.mxu1 %v3284_v32  ;;  %2407 = vmatprep.subr.mxu0 %v2835_v1  ;;  %v3599_v32 = vand.u32 4294901760, %v1280_v59  ;;  %v1405_v31 = vand.u32 4294901760, %v3597_v17  ;;  %v4070_v18 = vand.u32 4294901760, %v3318_v11 }
 0x14f   : > { %2442 = vmatprep.subr.mxu1 %v2835_v1  ;;  %2408 = vmatpush3.msra.mxu0 %v4066_v53  ;;  %v3612_v4 = vand.u32 4294901760, %v1279_v62  ;;  %v1386_v13 = vand.u32 4294901760, %v1385_v10 }
 0x150   : > { %2443 = vmatpush3.msra.mxu1 %v3295_v19  ;;  %2409 = vmatprep.subr.mxu0 %v2835_v1  ;;  %v1398_v19 = vand.u32 4294901760, %v3584_v56  ;;  %v3635_v6 = vsub.f32 %v1280_v59, %v3599_v32  ;;  %v1406_v16 = vsub.f32 %v3597_v17, %v1405_v31  ;;  %v1440_v59 = vand.u32 4294901760, %v3681_v41 }
 0x151   : > { %2444 = vmatprep.subr.mxu1 %v2835_v1  ;;  %2410 = vmatpush3.msra.mxu0 %v4067_v0  ;;  %v3652_v11 = vsub.f32 %v1279_v62, %v3612_v4 }
 0x152   : > { %2445 = vmatpush3.msra.mxu1 %v3321_v14  ;;  %2411 = vmatprep.subr.mxu0 %v2835_v1  ;;  %v3619_v14 = vsub.f32 %v1281_v51, %v3586_v61  ;;  %v1399_v20 = vsub.f32 %v3584_v56, %v1398_v19  ;;  %v1419_v36 = vand.u32 4294901760, %v3635_v6  ;;  %v1407_v58 = vand.u32 4294901760, %v1406_v16 }
 0x153   : > { %2446 = vmatprep.subr.mxu1 %v2835_v1  ;;  %2412 = vmatpush3.msra.mxu0 %v4068_v26  ;;  %v1426_v23 = vand.u32 4294901760, %v3652_v11  ;;  %v1441_v10 = vsub.f32 %v3681_v41, %v1440_v59 }
 0x154   : > { %2447 = vmatpush3.msra.mxu1 %v3253_v35  ;;  %2413 = vmatprep.subr.mxu0 %v2835_v1  ;;  %v3630_v35 = vand.u32 4294901760, %v1278_v7  ;;  %v1412_v33 = vand.u32 4294901760, %v3619_v14  ;;  %v1400_v52 = vand.u32 4294901760, %v1399_v20  ;;  %v1420_v28 = vsub.f32 %v3635_v6, %v1419_v36 }
 0x155   : > { %2448 = vmatprep.subr.mxu1 %v2835_v1  ;;  %2414 = vmatpush3.msra.mxu0 %v4069_v29 }
 0x156   : > { %2449 = vmatpush3.msra.mxu1 %v3337_v22  ;;  %2415 = vmatprep.subr.mxu0 %v2835_v1  ;;  %v1275_v22 = vmul.f32 %v3328_v9, %v3328_v9  ;;  %v1274_v9 = vmul.f32 %v3358_v37, %v3358_v37  ;;  %v3668_v49 = vsub.f32 %v1278_v7, %v3630_v35  ;;  %v4072_v37 = vand.u32 4294901760, %v3310_v44 }
 0x157   : > { %2450 = vmatprep.subr.mxu1 %v2835_v1  ;;  %2416 = vmatpush3.msra.mxu0 %v4070_v18  ;;  %v1413_v21 = vsub.f32 %v3619_v14, %v1412_v33  ;;  %v4073_v44 = vand.u32 4294901760, %v3354_v5  ;;  %v1427_v5 = vsub.f32 %v3652_v11, %v1426_v23  ;;  %v1421_v8 = vand.u32 4294901760, %v1420_v28 }
 0x158   : > { %2451 = vmatpush3.msra.mxu1 %v3373_v24  ;;  %2452 = vmatprep.mubr.msk.f32.mxu1 %vm2837_vm7, %v2835_v1  ;;  %v3661_v24 = vand.u32 4294901760, %v1276_v43  ;;  %v3671_v25 = vand.u32 4294901760, %v1275_v22  ;;  %v3684_v27 = vand.u32 4294901760, %v1274_v9  ;;  %v1433_v45 = vand.u32 4294901760, %v3668_v49 }
 0x159   : > { %2417 = vmatprep.subr.mxu0 %v2835_v1  ;;  %2453 = vmatmul.mubr.f32.vlgmr.msra.gmra.mxu1 %v3463_v2  ;;  %v1414_v51 = vand.u32 4294901760, %v1413_v21  ;;  %v1428_v26 = vand.u32 4294901760, %v1427_v5  ;;  %v1442_v18 = vand.u32 4294901760, %v1441_v10 }
 0x15a   : > { %2482 = vmatprep.subr.mxu1 %v2835_v1  ;;  %2418 = vmatpush3.msra.mxu0 %v4071_v12  ;;  %v3694_v48 = vsub.f32 %v1276_v43, %v3661_v24  ;;  %v3705_v53 = vsub.f32 %v1275_v22, %v3671_v25  ;;  %v1434_v62 = vsub.f32 %v3668_v49, %v1433_v45 }
 0x15b   : > { %2483 = vmatpush3.msra.mxu1 %v1386_v13  ;;  %2419 = vmatprep.subr.mxu0 %v2835_v1  ;;  %v3716_v7 = vsub.f32 %v1274_v9, %v3684_v27 }
 0x15c   : > { %2484 = vmatprep.subr.mxu1 %v2835_v1  ;;  %2420 = vmatpush3.msra.mxu0 %v4072_v37  ;;  %v1447_v0 = vand.u32 4294901760, %v3694_v48  ;;  %v1454_v34 = vand.u32 4294901760, %v3705_v53  ;;  %v1435_v29 = vand.u32 4294901760, %v1434_v62 }
 0x15d   : > { %2485 = vmatpush3.msra.mxu1 %v1393_v15  ;;  %2421 = vmatprep.subr.mxu0 %v2835_v1  ;;  %v1461_v43 = vand.u32 4294901760, %v3716_v7 }
 0x15e   : > { %2486 = vmatprep.subr.mxu1 %v2835_v1  ;;  %2422 = vmatpush3.msra.mxu0 %v4073_v44  ;;  %v1448_v39 = vsub.f32 %v3694_v48, %v1447_v0  ;;  %v1455_v13 = vsub.f32 %v3705_v53, %v1454_v34 }
 0x15f   : > { %2487 = vmatpush3.msra.mxu1 %v1400_v52  ;;  %2423 = vmatprep.subr.mxu0 %v2835_v1  ;;  %v1462_v22 = vsub.f32 %v3716_v7, %v1461_v43 }
 0x160   : > { %2488 = vmatprep.subr.mxu1 %v2835_v1  ;;  %2424 = vmatpush3.msra.mxu0 %v4074_v50  ;;  %v1449_v20 = vand.u32 4294901760, %v1448_v39  ;;  %v1456_v15 = vand.u32 4294901760, %v1455_v13 }
 0x161   : > { %2425 = vmatprep.mubr.msk.f32.mxu0 %vm2837_vm7, %v2835_v1  ;;  %2489 = vmatpush3.msra.mxu1 %v1407_v58  ;;  %v1463_v16 = vand.u32 4294901760, %v1462_v22 }
 0x162   : > { %2426 = vmatmul.mubr.f32.vlgmr.msra.gmra.mxu0 %v3463_v2  ;;  %2455 = vmatprep.subr.mxu0 %v2835_v1 }
 0x163   : > { %2490 = vmatprep.subr.mxu1 %v2835_v1  ;;  %2456 = vmatpush3.msra.mxu0 %v3537_v38 }
 0x164   : > { %2491 = vmatpush3.msra.mxu1 %v1414_v51  ;;  %2457 = vmatprep.subr.mxu0 %v2835_v1 }
 0x165   : > { %2492 = vmatprep.subr.mxu1 %v2835_v1  ;;  %2458 = vmatpush3.msra.mxu0 %v3546_v40 }
 0x166   : > { %2493 = vmatpush3.msra.mxu1 %v1421_v8  ;;  %2459 = vmatprep.subr.mxu0 %v2835_v1 }
 0x167   : > { %2494 = vmatprep.subr.mxu1 %v2835_v1  ;;  %2460 = vmatpush3.msra.mxu0 %v3555_v42 }
 0x168   : > { %2495 = vmatpush3.msra.mxu1 %v1428_v26  ;;  %2461 = vmatprep.subr.mxu0 %v2835_v1 }
 0x169   : > { %2496 = vmatprep.subr.mxu1 %v2835_v1  ;;  %2462 = vmatpush3.msra.mxu0 %v3567_v54 }
 0x16a   : > { %2497 = vmatpush3.msra.mxu1 %v1435_v29  ;;  %2463 = vmatprep.subr.mxu0 %v2835_v1 }
 0x16b   : > { %2498 = vmatprep.subr.mxu1 %v2835_v1  ;;  %2464 = vmatpush3.msra.mxu0 %v3586_v61 }
 0x16c   : > { %2499 = vmatpush3.msra.mxu1 %v1442_v18  ;;  %2465 = vmatprep.subr.mxu0 %v2835_v1 }
 0x16d   : > { %2500 = vmatprep.subr.mxu1 %v2835_v1  ;;  %2466 = vmatpush3.msra.mxu0 %v3599_v32 }
 0x16e   : > { %2501 = vmatpush3.msra.mxu1 %v1449_v20  ;;  %2467 = vmatprep.subr.mxu0 %v2835_v1 }
 0x16f   : > { %2502 = vmatprep.subr.mxu1 %v2835_v1  ;;  %2468 = vmatpush3.msra.mxu0 %v3612_v4 }
 0x170   : > { %2503 = vmatpush3.msra.mxu1 %v1456_v15  ;;  %2469 = vmatprep.subr.mxu0 %v2835_v1 }
 0x171   : > { %2504 = vmatprep.subr.mxu1 %v2835_v1  ;;  %2470 = vmatpush3.msra.mxu0 %v3630_v35 }
 0x172   : > { %2505 = vmatpush3.msra.mxu1 %v1463_v16  ;;  %2506 = vmatprep.mubr.msk.f32.mxu1 %vm2837_vm7, %v2835_v1 }
 0x173   : > { %2471 = vmatprep.subr.mxu0 %v2835_v1  ;;  %2507 = vmatmul.mubr.f32.vlgmr.msra.gmra.mxu1 %v3463_v2 }
 0x174   : > { %2536 = vmatprep.subr.mxu1 %v2835_v1  ;;  %2472 = vmatpush3.msra.mxu0 %v3643_v57 }
 0x175   : > { %2537 = vmatpush3.msra.mxu1 %v3537_v38  ;;  %2473 = vmatprep.subr.mxu0 %v2835_v1 }
 0x176   : > { %2538 = vmatprep.subr.mxu1 %v2835_v1  ;;  %2474 = vmatpush3.msra.mxu0 %v3661_v24 }
 0x177   : > { %2539 = vmatpush3.msra.mxu1 %v3546_v40  ;;  %2475 = vmatprep.subr.mxu0 %v2835_v1 }
 0x178   : > { %2540 = vmatprep.subr.mxu1 %v2835_v1  ;;  %2476 = vmatpush3.msra.mxu0 %v3671_v25 }
 0x179   : > { %2541 = vmatpush3.msra.mxu1 %v3555_v42  ;;  %2477 = vmatprep.subr.mxu0 %v2835_v1 }
 0x17a   : > { %2542 = vmatprep.subr.mxu1 %v2835_v1  ;;  %2478 = vmatpush3.msra.mxu0 %v3684_v27 }
 0x17b   : > { %2479 = vmatprep.mubr.msk.f32.mxu0 %vm2837_vm7, %v2835_v1  ;;  %2543 = vmatpush3.msra.mxu1 %v3567_v54 }
 0x17c   : > { %2480 = vmatmul.mubr.f32.vlgmr.msra.gmra.mxu0 %v3482_v3  ;;  %2509 = vmatprep.subr.mxu0 %v2835_v1 }
 0x17d   : > { %2544 = vmatprep.subr.mxu1 %v2835_v1  ;;  %2510 = vmatpush3.msra.mxu0 %v3561_v47 }
 0x17e   : > { %2545 = vmatpush3.msra.mxu1 %v3586_v61  ;;  %2511 = vmatprep.subr.mxu0 %v2835_v1 }
 0x17f   : > { %2546 = vmatprep.subr.mxu1 %v2835_v1  ;;  %2512 = vmatpush3.msra.mxu0 %v3573_v55 }
 0x180   : > { %2547 = vmatpush3.msra.mxu1 %v3599_v32  ;;  %2513 = vmatprep.subr.mxu0 %v2835_v1 }
 0x181   : > { %2548 = vmatprep.subr.mxu1 %v2835_v1  ;;  %2514 = vmatpush3.msra.mxu0 %v3584_v56 }
 0x182   : > { %2549 = vmatpush3.msra.mxu1 %v3612_v4  ;;  %2515 = vmatprep.subr.mxu0 %v2835_v1 }
 0x183   : > { %2550 = vmatprep.subr.mxu1 %v2835_v1  ;;  %2516 = vmatpush3.msra.mxu0 %v3597_v17 }
 0x184   : > { %2551 = vmatpush3.msra.mxu1 %v3630_v35  ;;  %2517 = vmatprep.subr.mxu0 %v2835_v1 }
 0x185   : > { %2552 = vmatprep.subr.mxu1 %v2835_v1  ;;  %2518 = vmatpush3.msra.mxu0 %v3619_v14 }
 0x186   : > { %2553 = vmatpush3.msra.mxu1 %v3643_v57  ;;  %2519 = vmatprep.subr.mxu0 %v2835_v1 }
 0x187   : > { %2554 = vmatprep.subr.mxu1 %v2835_v1  ;;  %2520 = vmatpush3.msra.mxu0 %v3635_v6 }
 0x188   : > { %2555 = vmatpush3.msra.mxu1 %v3661_v24  ;;  %2521 = vmatprep.subr.mxu0 %v2835_v1 }
 0x189   : > { %2556 = vmatprep.subr.mxu1 %v2835_v1  ;;  %2522 = vmatpush3.msra.mxu0 %v3652_v11 }
 0x18a   : > { %2557 = vmatpush3.msra.mxu1 %v3671_v25  ;;  %2523 = vmatprep.subr.mxu0 %v2835_v1 }
 0x18b   : > { %2558 = vmatprep.subr.mxu1 %v2835_v1  ;;  %2524 = vmatpush3.msra.mxu0 %v3668_v49 }
 0x18c   : > { %2559 = vmatpush3.msra.mxu1 %v3684_v27  ;;  %2560 = vmatprep.mubr.msk.f32.mxu1 %vm2837_vm7, %v2835_v1 }
 0x18d   : > { %2525 = vmatprep.subr.mxu0 %v2835_v1  ;;  %2561 = vmatmul.mubr.f32.vlgmr.msra.gmra.mxu1 %v3474_v30 }
 0x18e   : > { %2590 = vmatprep.subr.mxu1 %v2835_v1  ;;  %2526 = vmatpush3.msra.mxu0 %v3681_v41 }
 0x18f   : > { %2591 = vmatpush3.msra.mxu1 %v3537_v38  ;;  %2527 = vmatprep.subr.mxu0 %v2835_v1 }
 0x190   : > { %2592 = vmatprep.subr.mxu1 %v2835_v1  ;;  %2528 = vmatpush3.msra.mxu0 %v3694_v48 }
 0x191   : > { %2593 = vmatpush3.msra.mxu1 %v3546_v40  ;;  %2529 = vmatprep.subr.mxu0 %v2835_v1 }
 0x192   : > { %2594 = vmatprep.subr.mxu1 %v2835_v1  ;;  %2530 = vmatpush3.msra.mxu0 %v3705_v53 }
 0x193   : > { %2595 = vmatpush3.msra.mxu1 %v3555_v42  ;;  %2531 = vmatprep.subr.mxu0 %v2835_v1 }
 0x194   : > { %2596 = vmatprep.subr.mxu1 %v2835_v1  ;;  %2532 = vmatpush3.msra.mxu0 %v3716_v7 }
 0x195   : > { %2533 = vmatprep.mubr.msk.f32.mxu0 %vm2837_vm7, %v2835_v1  ;;  %2597 = vmatpush3.msra.mxu1 %v3567_v54 }
 0x196   : > { %2534 = vmatmul.mubr.f32.vlgmr.msra.gmra.mxu0 %v3466_v46  ;;  %2563 = vmatprep.subr.mxu0 %v2835_v1 }
 0x197   : > { %2598 = vmatprep.subr.mxu1 %v2835_v1  ;;  %2564 = vmatpush3.msra.mxu0 %v1384_v60 }
 0x198   : > { %2599 = vmatpush3.msra.mxu1 %v3586_v61  ;;  %2565 = vmatprep.subr.mxu0 %v2835_v1 }
 0x199   : > { %2600 = vmatprep.subr.mxu1 %v2835_v1  ;;  %2566 = vmatpush3.msra.mxu0 %v1391_v63 }
 0x19a   : > { %2601 = vmatpush3.msra.mxu1 %v3599_v32  ;;  %2567 = vmatprep.subr.mxu0 %v2835_v1 }
 0x19b   : > { %2602 = vmatprep.subr.mxu1 %v2835_v1  ;;  %2568 = vmatpush3.msra.mxu0 %v1398_v19 }
 0x19c   : > { %2603 = vmatpush3.msra.mxu1 %v3612_v4  ;;  %2569 = vmatprep.subr.mxu0 %v2835_v1 }
 0x19d   : > { %2604 = vmatprep.subr.mxu1 %v2835_v1  ;;  %2570 = vmatpush3.msra.mxu0 %v1405_v31 }
 0x19e   : > { %2605 = vmatpush3.msra.mxu1 %v3630_v35  ;;  %2571 = vmatprep.subr.mxu0 %v2835_v1 }
 0x19f   : > { %2606 = vmatprep.subr.mxu1 %v2835_v1  ;;  %2572 = vmatpush3.msra.mxu0 %v1412_v33 }
 0x1a0   : > { %2607 = vmatpush3.msra.mxu1 %v3643_v57  ;;  %2573 = vmatprep.subr.mxu0 %v2835_v1 }
 0x1a1   : > { %2608 = vmatprep.subr.mxu1 %v2835_v1  ;;  %2574 = vmatpush3.msra.mxu0 %v1419_v36 }
 0x1a2   : > { %2609 = vmatpush3.msra.mxu1 %v3661_v24  ;;  %2575 = vmatprep.subr.mxu0 %v2835_v1 }
 0x1a3   : > { %2610 = vmatprep.subr.mxu1 %v2835_v1  ;;  %2576 = vmatpush3.msra.mxu0 %v1426_v23 }
 0x1a4   : > { %2611 = vmatpush3.msra.mxu1 %v3671_v25  ;;  %2577 = vmatprep.subr.mxu0 %v2835_v1 }
 0x1a5   : > { %2612 = vmatprep.subr.mxu1 %v2835_v1  ;;  %2578 = vmatpush3.msra.mxu0 %v1433_v45 }
 0x1a6   : > { %2613 = vmatpush3.msra.mxu1 %v3684_v27  ;;  %2614 = vmatprep.mubr.msk.f32.mxu1 %vm2837_vm7, %v2835_v1 }
 0x1a7   : > { %2579 = vmatprep.subr.mxu0 %v2835_v1  ;;  %2615 = vmatmul.mubr.f32.vlgmr.msra.gmra.mxu1 %v3463_v2 }
 0x1a8   : > { %2580 = vmatpush3.msra.mxu0 %v1440_v59  ;;  %2587 = vmatprep.mubr.msk.f32.mxu0 %vm2837_vm7, %v2835_v1 }
 0x1a9   : > { %2581 = vmatprep.subr.mxu0 %v2835_v1 }
 0x1aa   : > { %2582 = vmatpush3.msra.mxu0 %v1447_v0 }
 0x1ab   : > { %2583 = vmatprep.subr.mxu0 %v2835_v1 }
 0x1ac   : > { %2584 = vmatpush3.msra.mxu0 %v1454_v34 }
 0x1ad   : > { %2585 = vmatprep.subr.mxu0 %v2835_v1  ;;  %v645_v1 = vld [vmem:[%s3853_s13] sm:$0xf] }
 0x1ae   : > { %2586 = vmatpush3.msra.mxu0 %v1461_v43 }
 0x1af   : > { %2588 = vmatmul.mubr.f32.vlgmr.msra.gmra.mxu0 %v3463_v2 }
 0x1e7   : > { %v896_v46 = vpop.f32.mrf.mxu1 }
 0x1e9   : > { %v2346_v30 = vpop.f32.mrf.mxu1 }
 0x1ef   : > { %v765_v3 = vpop.f32.mrf.mxu0 }
 0x1f0   : > { %v897_v55 = vadd.f32 %v896_v46, %v765_v3 }
 0x1f1   : > { %v2319_v38 = vpop.f32.mrf.mxu0 }
 0x1ff   : > { %v1077_v40 = vpop.f32.mrf.mxu1 }
 0x201   : > { %v2400_v42 = vpop.f32.mrf.mxu1 }
 0x208   : > { %v992_v47 = vpop.f32.mrf.mxu0 }
 0x209   : > { %v993_v56 = vadd.f32 %v992_v47, %v897_v55 }
 0x20a   : > { %v2373_v54 = vpop.f32.mrf.mxu0 }
 0x20b   : > { %v1078_v61 = vadd.f32 %v1077_v40, %v993_v56 }
 0x219   : > { %v1267_v2 = vpop.f32.mrf.mxu1 }
 0x21b   : > { %v2454_v60 = vpop.f32.mrf.mxu1 }
 0x222   : > { %v1184_v63 = vpop.f32.mrf.mxu0 }
 0x223   : > { %v1185_v17 = vadd.f32 %v1184_v63, %v1078_v61 }
 0x224   : > { %v2427_v32 = vpop.f32.mrf.mxu0 }
 0x225   : > { %v1268_v19 = vadd.f32 %v1267_v2, %v1185_v17 }
 0x227   : > { %v1271_v4 = vadd.f32 %v1268_v19, %v645_v1 }
 0x229   : > { %1272 = vst [vmem:[%s3853_s13] sm:$0xf] %v1271_v4 }
 0x22a   : > { %2711 = shalt.err (!%p2708_p11)
}
 0x22b   : > { %s2712_s29 = scalar_lea.hbm %s1932_s19, 64  ;;  %s2716_s17 = scalar_lea.hbm %s4021_s3, 128 }
 0x22c   : > { %p2713_p12 = scmp.ne.s32.totalorder %s1932_s19, %s2712_s29  ;;  %p2717_p2 = scmp.lt.s32.totalorder %s1932_s19, %s4021_s3 }
 0x22d   : > { %p2718_p3 = scmp.lt.s32.totalorder %s2716_s17, %s2712_s29 }
 0x22e   : > { %p2714_p0 = pnand %p2713_p12, %p2916_p9 }
 0x22f   : > { %p2719_p4 = por %p2718_p3, %p2717_p2 }
 0x230   : > { %p2715_p1 = pneg %p2714_p0 }
 0x232   : > { %p2720_p5 = pnand %p2719_p4, %p2715_p1 }
 0x234   : > { %2723 = shalt.err (!%p2720_p5)
}
 0x235   : > { %2617 = dma.vmem_to_hbm [thread:$0]  (%p2916_p9), %s1935_s16, 64, %s1932_s19, %s1912_s20   ;;  %v1500_v14 = vpop.f32.mrf.mxu1  ;;  %v1273_v21 = vld [vmem:[%s3898_s14] sm:$0xf] }
 0x236   : > { %s3926_s29 = sand.u32 1, %s2096_s28   ;;  %s1947_s15 = sshll.u32 %s3898_s14, 4  ;;  %s3939_s15 = int_to_ptr.vmem [resolvable:$true] %s1947_s15 }
 0x237   : > { %v2508_v31 = vpop.f32.mrf.mxu1  ;;  %s2134_s16 = sshll.u32 %s2824_s25, 4  ;;  %s1960_s19 = sshll.u32 %s3158_s22, 4  ;;  %s3946_s19 = int_to_ptr.vmem [resolvable:$true] %s1960_s19 }
 0x238   : > { %s4075_s20 = sshll.u32 %s2824_s25, 6  ;;  %s3944_s21 = scalar_lea.hbm %s4023_s5, %s2134_s16 }
 0x239   : > { %s3937_s11 = scalar_lea.hbm %s4022_s4, %s4075_s20  ;;  %s1917_s22 = scalar_lea.sflag [#allocation7], %s3926_s29 }
 0x23a   : > { %s2724_s25 = scalar_lea.vmem %s3939_s15, 64  ;;  %s2839_s13 = smov [#allocation6]  }
 0x23b   : > { %p2725_p6 = scmp.ne.s32.totalorder %s3939_s15, %s2724_s25  ;;  %s2728_s17 = sshll.u32 %s2839_s13, 4  ;;  %s2729_s17 = int_to_ptr.vmem [resolvable:$false] %s2728_s17 }
 0x23c   : > { %v1369_v35 = vpop.f32.mrf.mxu0  ;;  %s2730_s18 = scalar_lea.vmem %s2729_s17, 128  ;;  %p2731_p10 = scmp.lt.s32.totalorder %s3939_s15, %s2729_s17 }
 0x23d   : > { %v1501_v12 = vadd.f32 %v1500_v14, %v1369_v35  ;;  %p2726_p7 = pnand %p2725_p6, %p2916_p9  ;;  %p2732_p11 = scmp.lt.s32.totalorder %s2730_s18, %s2724_s25 }
 0x23e   : > { %v2481_v6 = vpop.f32.mrf.mxu0 }
 0x23f   : > { %p2727_p8 = pneg %p2726_p7  ;;  %p2733_p12 = por %p2732_p11, %p2731_p10 }
 0x241   : > { %p2734_p0 = pnand %p2733_p12, %p2727_p8 }
 0x24d   : > { %v1681_v57 = vpop.f32.mrf.mxu1 }
 0x24f   : > { %v2562_v33 = vpop.f32.mrf.mxu1 }
 0x256   : > { %v1596_v11 = vpop.f32.mrf.mxu0 }
 0x257   : > { %v1597_v49 = vadd.f32 %v1596_v11, %v1501_v12 }
 0x258   : > { %v2535_v9 = vpop.f32.mrf.mxu0 }
 0x259   : > { %v1682_v52 = vadd.f32 %v1681_v57, %v1597_v49 }
 0x267   : > { %v1871_v24 = vpop.f32.mrf.mxu1 }
 0x269   : > { %v2616_v36 = vpop.f32.mrf.mxu1 }
 0x26f   : > { %v1788_v25 = vpop.f32.mrf.mxu0 }
 0x270   : > { %v1789_v37 = vadd.f32 %v1788_v25, %v1682_v52 }
 0x271   : > { %v2589_v23 = vpop.f32.mrf.mxu0 }
 0x272   : > { %v1872_v41 = vadd.f32 %v1871_v24, %v1789_v37 }
 0x274   : > { %v1875_v58 = vadd.f32 %v1872_v41, %v1273_v21 }
 0x276   : > { %1876 = vst [vmem:[%s3898_s14] sm:$0xf] %v1875_v58 }
 0x277   : > { %2737 = shalt.err (!%p2734_p0)
}
 0x278   : > { %s2738_s14 = scalar_lea.hbm %s3937_s11, 64  ;;  %s2742_s6 = scalar_lea.hbm %s4022_s4, 128 }
 0x279   : > { %p2739_p1 = scmp.ne.s32.totalorder %s3937_s11, %s2738_s14  ;;  %p2743_p4 = scmp.lt.s32.totalorder %s3937_s11, %s4022_s4 }
 0x27a   : > { %p2744_p5 = scmp.lt.s32.totalorder %s2742_s6, %s2738_s14 }
 0x27b   : > { %p2740_p2 = pnand %p2739_p1, %p2916_p9 }
 0x27c   : > { %p2745_p6 = por %p2744_p5, %p2743_p4 }
 0x27d   : > { %p2741_p3 = pneg %p2740_p2 }
 0x27f   : > { %p2746_p7 = pnand %p2745_p6, %p2741_p3 }
 0x281   : > { %2749 = shalt.err (!%p2746_p7)
}
 0x282   : > { %2618 = dma.vmem_to_hbm [thread:$0]  (%p2916_p9), %s3939_s15, 64, %s3937_s11, %s1917_s22  }
 0x283   : > { %s2750_s28 = scalar_lea.vmem %s3946_s19, 16  ;;  %s2840_s25 = smov [#allocation8]  }
 0x284   : > { %p2751_p8 = scmp.ne.s32.totalorder %s3946_s19, %s2750_s28  ;;  %s2754_s13 = sshll.u32 %s2840_s25, 4  ;;  %s2755_s13 = int_to_ptr.vmem [resolvable:$false] %s2754_s13 }
 0x285   : > { %s2756_s17 = scalar_lea.vmem %s2755_s13, 32  ;;  %p2757_p12 = scmp.lt.s32.totalorder %s3946_s19, %s2755_s13 }
 0x286   : > { %p2752_p10 = pnand %p2751_p8, %p2916_p9  ;;  %p2758_p0 = scmp.lt.s32.totalorder %s2756_s17, %s2750_s28 }
 0x288   : > { %p2753_p11 = pneg %p2752_p10  ;;  %p2759_p1 = por %p2758_p0, %p2757_p12 }
 0x28a   : > { %p2760_p2 = pnand %p2759_p1, %p2753_p11 }
 0x28c   : > { %2763 = shalt.err (!%p2760_p2)
}
 0x28d   : > { %s2764_s18 = scalar_lea.hbm %s3944_s21, 16  ;;  %s2768_s14 = scalar_lea.hbm %s4023_s5, 32 }
 0x28e   : > { %p2765_p3 = scmp.ne.s32.totalorder %s3944_s21, %s2764_s18  ;;  %p2769_p6 = scmp.lt.s32.totalorder %s3944_s21, %s4023_s5 }
 0x28f   : > { %p2770_p7 = scmp.lt.s32.totalorder %s2768_s14, %s2764_s18 }
 0x290   : > { %p2766_p4 = pnand %p2765_p3, %p2916_p9 }
 0x291   : > { %p2771_p8 = por %p2770_p7, %p2769_p6 }
 0x292   : > { %p2767_p5 = pneg %p2766_p4 }
 0x294   : > { %p2772_p10 = pnand %p2771_p8, %p2767_p5 }
 0x296   : > { %2775 = shalt.err (!%p2772_p10)
}
 0x297   : > { %2619 = dma.vmem_to_hbm [thread:$0]  (%p2916_p9), %s3946_s19, 16, %s3944_s21, %s1917_s22  }
 0x298 PF: > { %p2633_p11 = scmp.ge.s32.totalorder %s2832_s27, 2  ;;  %s1972_s6 = sand.u32 1, %s2812_s23  }
 0x299   : > { %s1973_s8 = scalar_lea.sflag [#allocation5], %s1972_s6 }
 0x29a   : > { %p2624_p12 = pnand %p2633_p11, %p2925_p13 }
 0x29c   : > { %p2625_p0 = pneg %p2624_p12 }
 0x29e   : > { %2803 = dma.done.wait (%p2625_p0), %s1973_s8, 64  }
 0x29f   : > { %2805 = vsyncadd (%p2625_p0), %s1973_s8, 4294967232  ;;  %s4076_s12 = sadd.s32 4294967294, %s2832_s27  }
 0x2a0   : > { %s1981_s7 = sand.u32 1, %s4076_s12  }
 0x2a1   : > { %s1982_s28 = scalar_lea.sflag [#allocation7], %s1981_s7 }
 0x2a2   : > { %2807 = dma.done.wait (%p2625_p0), %s1982_s28, 80  }
 0x2a3   : > { %2809 = vsyncadd (%p2625_p0), %s1982_s28, 4294967216  ;;  %s28_s27 = sadd.s32 1, %s2832_s27   ;;  %s4077_s23 = smov %s2816_s0 }
 0x2a4   : > { %p25_p9 = scmp.ge.s32.totalorder %s28_s27, 4   ;;  %s4078_s0 = smov %s2820_s24 }
 0x2a5   : > { %s4079_s24 = smov %s2931_s10  ;;  %s4080_s25 = smov %s2828_s26 }
 0x2a6   : > { %s4081_s26 = smov %s4083_s30  ;;  %27 = sbr.rel (!%p25_p9) target bundleno = 21 (0x15), region = 102 }
 0x2ab   :  { %1995 = vsyncpa [#allocation5], 1 }
 0x2ac   :  { %1997 = vsyncpa [#allocation5 + $0x1], 1 }
 0x2ad   :  { %1998 = vsyncpa [#allocation7], 1 }
 0x2ae   :  { %2000 = vsyncpa [#allocation7 + $0x1], 1 }

</bundles_post_ra>
